<compile_context>
chip_gen: v7x
topology: tpu7x:2x2x1
jax: 0.10.0
libtpu: 0.0.40
codegen_flags: <defaults>
</compile_context>

<pallas_src>
import jax
import jax.numpy as jnp
from jax.experimental import pallas as pl
from jax.experimental.pallas import tpu as pltpu


# --------------------------------------------------------------------------
# Kernel
# --------------------------------------------------------------------------
def _semantic_alignment_kernel(phr_ref, vis_ref, visf_ref, wT_ref, ubig_ref,
                               b_ref, w_rep_ref, rep_ref, sum_ref,
                               al_ref, wt_ref, en_ref):
    # phr_ref : (Bb, P, Q)      vis_ref : (Bb, V, F)    visf_ref : (Bb, V*F)
    # wT_ref  : (Q, Bn)         ubig_ref: (V*F, V*Bn)   b_ref    : (1, Bn)
    # w_rep_ref: (1, V*Bn)      rep_ref : (Bn, V*Bn)    sum_ref  : (V*Bn, V)
    # al_ref  : (Bb, P, F)      wt_ref / en_ref : (Bb, P, V)
    Bb, P, Q = phr_ref.shape
    _, V, F = vis_ref.shape
    VBn = rep_ref.shape[-1]                       # V * bottleneck_size

    phr = phr_ref[...]
    vis = vis_ref[...]

    # --- projections on the MXU; bias folded into the small 2-D result ----
    Wh = jnp.dot(phr.reshape(Bb * P, Q), wT_ref[...],
                 preferred_element_type=jnp.float32) + b_ref[...]     # (Bb*P, Bn)

    # Lane-dense U projection: (Bb, V*F) x block-diag(U^T) -> (v,k) on lanes.
    Uv_flat = jnp.dot(visf_ref[...], ubig_ref[...],
                      preferred_element_type=jnp.float32)             # (Bb, V*Bn)

    # Lane-replicate (Wh + b) over v with a constant 0/1 matmul (MXU idle).
    Wh_rep = jnp.dot(Wh, rep_ref[...],
                     preferred_element_type=jnp.float32)              # (Bb*P, V*Bn)

    # --- lane-dense elementwise chain: full 128-lane vregs on VPU/EUP -----
    s = Wh_rep.reshape(Bb, P, VBn) + Uv_flat[:, None, :]              # (Bb, P, V*Bn)
    t = jnp.tanh(s) * w_rep_ref[...]                                  # (Bb, P, V*Bn)

    # Per-v reduction over the bottleneck via a constant 0/1 summation matmul.
    energies = jnp.dot(t.reshape(Bb * P, VBn), sum_ref[...],
                       preferred_element_type=jnp.float32)            # (Bb*P, V)

    # --- softmax over the visual axis (exact: weights are an external output)
    m = jnp.max(energies, axis=-1, keepdims=True)
    e = jnp.exp(energies - m)
    weights = e / jnp.sum(e, axis=-1, keepdims=True)                  # (Bb*P, V)

    en_ref[...] = energies.reshape(Bb, P, V).astype(en_ref.dtype)
    wt_ref[...] = weights.reshape(Bb, P, V).astype(wt_ref.dtype)

    # --- aligned_vis_feats = weights @ vis_feats (batched MXU matmul) -----
    aligned = jnp.einsum('bpv,bvf->bpf',
                         weights.reshape(Bb, P, V).astype(vis.dtype), vis,
                         preferred_element_type=jnp.float32)          # (Bb, P, F)
    al_ref[...] = aligned.astype(al_ref.dtype)


# --------------------------------------------------------------------------
# Device-aware blocking helpers
# --------------------------------------------------------------------------
def _device_info():
    """Return (physical VMEM bytes per core, multiple-TensorCore chip?)."""
    kind = ""
    try:
        kind = jax.devices()[0].device_kind.lower()
    except Exception:
        pass
    multi_tc = ("v7" in kind) or ("7x" in kind)
    vmem = None
    try:
        vmem = getattr(pltpu.get_tpu_info(), "vmem_capacity_bytes", None)
    except Exception:
        vmem = None
    if not vmem:
        vmem = (64 << 20) if multi_tc else (128 << 20)
    return int(vmem), multi_tc


def _vmem_estimate(bb, P, V, Q, F, Bn, in_bytes):
    """Honest per-step VMEM estimate: double-buffered blocks + invariant
    operands + every live f32 intermediate of the kernel body."""
    f32 = 4
    vbn = V * Bn
    inputs = 2 * (bb * P * Q + 2 * bb * V * F) * in_bytes            # phr, vis, vis_flat
    consts = 2 * f32 * (Q * Bn                                        # W^T
                        + (V * F) * vbn                               # block-diag U^T
                        + Bn + vbn                                    # bias, lane-tiled w
                        + Bn * vbn                                    # replication 0/1
                        + vbn * V)                                    # summation 0/1
    outputs = 2 * (bb * P * F * in_bytes + 2 * bb * P * V * f32)      # aligned, wts, en
    inter = f32 * (bb * P * Bn + bb * vbn                             # Wh, Uv_flat
                   + 3 * bb * P * vbn                                 # Wh_rep, s, tanh*w
                   + 3 * bb * P * V                                   # energies, e, weights
                   + bb * P * F)                                      # aligned (f32)
    return inputs + consts + outputs + inter


def _pick_batch_block(B, P, V, Q, F, Bn, in_bytes, *, vmem_budget, multi_tc):
    divisors = [d for d in range(1, B + 1) if B % d == 0]
    fitting = [d for d in divisors
               if _vmem_estimate(d, P, V, Q, F, Bn, in_bytes) <= vmem_budget]
    if not fitting:
        fitting = [1]
    bb = max(fitting)                    # v5e/v6e: one big step if it fits
    if multi_tc and B >= 2:
        # v7x: both TensorCores only get work via parallel grid steps; pick the
        # largest block that still leaves an even number (>=2) of steps.
        even = [d for d in fitting if (B // d) >= 2 and (B // d) % 2 == 0]
        multi = [d for d in fitting if (B // d) >= 2]
        if even:
            bb = max(even)
        elif multi:
            bb = max(multi)
    return bb


# --------------------------------------------------------------------------
# Wrapper
# --------------------------------------------------------------------------
def semantic_alignment(phr_feats, vis_feats, W, U, b, w, *, b_blk=None):
    """phr_feats: (B,P,Q), vis_feats: (B,V,F).
    W: (Bn,Q), U: (Bn,F), b: (Bn,), w: (1,Bn) -- nn.Linear.weight convention."""
    B, P, Q = phr_feats.shape
    _, V, F = vis_feats.shape
    Bn = W.shape[0]
    VBn = V * Bn
    in_bytes = jnp.dtype(phr_feats.dtype).itemsize

    phys_vmem, multi_tc = _device_info()
    vmem_budget = phys_vmem // 2                       # headroom for compiler scratch
    if b_blk is None:
        b_blk = _pick_batch_block(B, P, V, Q, F, Bn, in_bytes,
                                  vmem_budget=vmem_budget, multi_tc=multi_tc)
    assert B % b_blk == 0, "batch must be divisible by the batch block"
    n_steps = B // b_blk

    est = _vmem_estimate(b_blk, P, V, Q, F, Bn, in_bytes)
    vmem_limit = int(min(phys_vmem * 3 // 4, max(32 << 20, 2 * est)))

    # Parameters / kernel-invariant constants (nn.Linear weight convention).
    f32 = jnp.float32
    wT = W.T.astype(f32)                                              # (Q, Bn)
    ubig = jnp.kron(jnp.eye(V, dtype=f32), U.T.astype(f32))           # (V*F, V*Bn)
    b2 = b.reshape(1, Bn).astype(f32)                                 # (1, Bn)
    w_rep = jnp.tile(w.reshape(1, Bn).astype(f32), (1, V))            # (1, V*Bn)
    repmat = jnp.tile(jnp.eye(Bn, dtype=f32), (1, V))                 # (Bn, V*Bn)
    summat = jnp.kron(jnp.eye(V, dtype=f32),
                      jnp.ones((Bn, 1), dtype=f32))                   # (V*Bn, V)

    # vis flattened wrapper-side so the U projection lands lane-packed; the
    # middle unit dim keeps every block's last two dims equal to the full dims.
    vis_flat = vis_feats.reshape(B, 1, V * F)

    out_shapes = (
        jax.ShapeDtypeStruct((B, P, F), phr_feats.dtype),             # aligned
        jax.ShapeDtypeStruct((B, P, V), jnp.float32),                 # weights
        jax.ShapeDtypeStruct((B, P, V), jnp.float32),                 # energies
    )

    aligned, weights, energies = pl.pallas_call(
        _semantic_alignment_kernel,
        out_shape=out_shapes,
        grid=(n_steps,),
        in_specs=[
            pl.BlockSpec((b_blk, P, Q), lambda bi: (bi, 0, 0)),       # phr_feats
            pl.BlockSpec((b_blk, V, F), lambda bi: (bi, 0, 0)),       # vis_feats
            pl.BlockSpec((b_blk, None, V * F), lambda bi: (bi, 0, 0)),# vis_flat
            pl.BlockSpec((Q, Bn), lambda bi: (0, 0)),                 # W^T
            pl.BlockSpec((V * F, VBn), lambda bi: (0, 0)),            # block-diag U^T
            pl.BlockSpec((1, Bn), lambda bi: (0, 0)),                 # bias
            pl.BlockSpec((1, VBn), lambda bi: (0, 0)),                # lane-tiled w
            pl.BlockSpec((Bn, VBn), lambda bi: (0, 0)),               # replication 0/1
            pl.BlockSpec((VBn, V), lambda bi: (0, 0)),                # summation 0/1
        ],
        out_specs=[
            pl.BlockSpec((b_blk, P, F), lambda bi: (bi, 0, 0)),
            pl.BlockSpec((b_blk, P, V), lambda bi: (bi, 0, 0)),
            pl.BlockSpec((b_blk, P, V), lambda bi: (bi, 0, 0)),
        ],
        compiler_params=pltpu.CompilerParams(
            dimension_semantics=("parallel",),
            vmem_limit_bytes=vmem_limit,
        ),
    )(phr_feats, vis_feats, vis_flat, wT, ubig, b2, w_rep, repmat, summat)

    # Concat stays wrapper-side: the phr half is a pure passthrough copy.
    semantic_group_feats = jnp.concatenate(
        [phr_feats, aligned.astype(phr_feats.dtype)], axis=2)
    return semantic_group_feats, weights, energies


# --------------------------------------------------------------------------
# Pure-JAX reference (mirrors the PyTorch forward)
# --------------------------------------------------------------------------
def semantic_alignment_ref(phr_feats, vis_feats, W, U, b, w):
    Wh = phr_feats @ W.T
    Uv = vis_feats @ U.T
    s = Wh[:, :, None, :] + Uv[:, None, :, :] + b
    energies = jnp.squeeze(jnp.tanh(s) @ w.T, axis=-1)
    weights = jax.nn.softmax(energies, axis=2)
    aligned = jnp.einsum('bpv,bvf->bpf', weights, vis_feats)
    sg = jnp.concatenate([phr_feats, aligned], axis=2)
    return sg, weights, energies


if __name__ == "__main__":
    # Small shapes: B=8, P=8 phrases, V=16 visual tokens,
    # query_size=32, feat_size=64, bottleneck_size=16.
    B, P, V = 8, 8, 16
    Q, F, Bn = 32, 64, 16

    key = jax.random.PRNGKey(0)
    k1, k2, k3, k4, k5 = jax.random.split(key, 5)

    phr_feats = jax.random.normal(k1, (B, P, Q), dtype=jnp.float32)
    vis_feats = jax.random.normal(k2, (B, V, F), dtype=jnp.float32)

    # Deterministic synthetic parameters (nn.Linear weight shapes).
    W = 0.1 * jax.random.normal(k3, (Bn, Q), dtype=jnp.float32)   # self.W.weight
    U = 0.1 * jax.random.normal(k4, (Bn, F), dtype=jnp.float32)   # self.U.weight
    b = jnp.ones((Bn,), dtype=jnp.float32)                        # self.b (init = ones)
    w = 0.1 * jax.random.normal(k5, (1, Bn), dtype=jnp.float32)   # self.w.weight

    sg, wts, en = semantic_alignment(phr_feats, vis_feats, W, U, b, w)
    jax.block_until_ready((sg, wts, en))

    sg_r, wts_r, en_r = semantic_alignment_ref(phr_feats, vis_feats, W, U, b, w)
    assert jnp.allclose(en, en_r, atol=2e-4, rtol=2e-4)
    assert jnp.allclose(wts, wts_r, atol=5e-3, rtol=5e-3)
    assert jnp.allclose(sg, sg_r, atol=5e-3, rtol=5e-3)
    # exact-reciprocal softmax: rows of `weights` must sum to 1
    assert jnp.allclose(jnp.sum(wts, axis=2), 1.0, atol=1e-4)

    print("KERNEL_OK")
</pallas_src>

<mosaic_0001>
module attributes {stable_mosaic.version = 11 : i64} {
  func.func @_semantic_alignment_kernel(%arg0: i32, %arg1: memref<8x8x32xf32, #tpu.memory_space<vmem>>, %arg2: memref<8x16x64xf32, #tpu.memory_space<vmem>>, %arg3: memref<8x1x1024xf32, #tpu.memory_space<vmem>>, %arg4: memref<32x16xf32, #tpu.memory_space<vmem>>, %arg5: memref<1024x256xf32, #tpu.memory_space<vmem>>, %arg6: memref<1x16xf32, #tpu.memory_space<vmem>>, %arg7: memref<1x256xf32, #tpu.memory_space<vmem>>, %arg8: memref<16x256xf32, #tpu.memory_space<vmem>>, %arg9: memref<256x16xf32, #tpu.memory_space<vmem>>, %arg10: memref<8x8x64xf32, #tpu.memory_space<vmem>>, %arg11: memref<8x8x16xf32, #tpu.memory_space<vmem>>, %arg12: memref<8x8x16xf32, #tpu.memory_space<vmem>>) attributes {dimension_semantics = [#tpu.dimension_semantics<parallel>], iteration_bounds = array<i64: 1>, scalar_prefetch = 0 : i64, scratch_operands = 0 : i64, tpu.core_type = #tpu.core_type<tc>, window_params = [{transform_indices = @transform_0, window_bounds = array<i64: 8, 8, 32>}, {transform_indices = @transform_1, window_bounds = array<i64: 8, 16, 64>}, {transform_indices = @transform_2, window_bounds = array<i64: 8, 1, 1024>}, {pipeline_mode = #tpu.pipeline_mode<synchronous>, transform_indices = @transform_3, window_bounds = array<i64: 32, 16>}, {pipeline_mode = #tpu.pipeline_mode<synchronous>, transform_indices = @transform_4, window_bounds = array<i64: 1024, 256>}, {pipeline_mode = #tpu.pipeline_mode<synchronous>, transform_indices = @transform_5, window_bounds = array<i64: 1, 16>}, {pipeline_mode = #tpu.pipeline_mode<synchronous>, transform_indices = @transform_6, window_bounds = array<i64: 1, 256>}, {pipeline_mode = #tpu.pipeline_mode<synchronous>, transform_indices = @transform_7, window_bounds = array<i64: 16, 256>}, {pipeline_mode = #tpu.pipeline_mode<synchronous>, transform_indices = @transform_8, window_bounds = array<i64: 256, 16>}, {transform_indices = @transform_9, window_bounds = array<i64: 8, 8, 64>}, {transform_indices = @transform_10, window_bounds = array<i64: 8, 8, 16>}, {transform_indices = @transform_11, window_bounds = array<i64: 8, 8, 16>}]} {
    %c0 = arith.constant 0 : index
    %c0_0 = arith.constant 0 : index
    %c0_1 = arith.constant 0 : index
    %0 = vector.load %arg1[%c0, %c0_0, %c0_1] : memref<8x8x32xf32, #tpu.memory_space<vmem>>, vector<8x8x32xf32>
    %c0_2 = arith.constant 0 : index
    %c0_3 = arith.constant 0 : index
    %c0_4 = arith.constant 0 : index
    %1 = vector.load %arg2[%c0_2, %c0_3, %c0_4] : memref<8x16x64xf32, #tpu.memory_space<vmem>>, vector<8x16x64xf32>
    %2 = vector.shape_cast %0 : vector<8x8x32xf32> to vector<64x32xf32>
    %c0_5 = arith.constant 0 : index
    %c0_6 = arith.constant 0 : index
    %3 = vector.load %arg4[%c0_5, %c0_6] : memref<32x16xf32, #tpu.memory_space<vmem>>, vector<32x16xf32>
    %cst = arith.constant dense<0.000000e+00> : vector<64x16xf32>
    %4 = tpu.matmul %2, %3, %cst {dimension_numbers = #tpu.dot_dimension_numbers<[1], [0], [0], [1], [0, 0, 1, 1], [], []>} : vector<64x32xf32>, vector<32x16xf32>, vector<64x16xf32> -> vector<64x16xf32>
    %c0_7 = arith.constant 0 : index
    %c0_8 = arith.constant 0 : index
    %5 = vector.load %arg6[%c0_7, %c0_8] : memref<1x16xf32, #tpu.memory_space<vmem>>, vector<1x16xf32>
    %6 = vector.broadcast %5 : vector<1x16xf32> to vector<64x16xf32>
    %7 = arith.addf %4, %6 : vector<64x16xf32>
    %c0_9 = arith.constant 0 : index
    %c0_10 = arith.constant 0 : index
    %c0_11 = arith.constant 0 : index
    %8 = vector.load %arg3[%c0_9, %c0_10, %c0_11] : memref<8x1x1024xf32, #tpu.memory_space<vmem>>, vector<8x1x1024xf32>
    %9 = vector.shape_cast %8 : vector<8x1x1024xf32> to vector<8x1024xf32>
    %c0_12 = arith.constant 0 : index
    %c0_13 = arith.constant 0 : index
    %10 = vector.load %arg5[%c0_12, %c0_13] : memref<1024x256xf32, #tpu.memory_space<vmem>>, vector<1024x256xf32>
    %cst_14 = arith.constant dense<0.000000e+00> : vector<8x256xf32>
    %11 = tpu.matmul %9, %10, %cst_14 {dimension_numbers = #tpu.dot_dimension_numbers<[1], [0], [0], [1], [0, 0, 1, 1], [], []>} : vector<8x1024xf32>, vector<1024x256xf32>, vector<8x256xf32> -> vector<8x256xf32>
    %c0_15 = arith.constant 0 : index
    %c0_16 = arith.constant 0 : index
    %12 = vector.load %arg8[%c0_15, %c0_16] : memref<16x256xf32, #tpu.memory_space<vmem>>, vector<16x256xf32>
    %cst_17 = arith.constant dense<0.000000e+00> : vector<64x256xf32>
    %13 = tpu.matmul %7, %12, %cst_17 {dimension_numbers = #tpu.dot_dimension_numbers<[1], [0], [0], [1], [0, 0, 1, 1], [], []>} : vector<64x16xf32>, vector<16x256xf32>, vector<64x256xf32> -> vector<64x256xf32>
    %14 = vector.shape_cast %13 : vector<64x256xf32> to vector<8x8x256xf32>
    %15 = vector.shape_cast %11 : vector<8x256xf32> to vector<8x1x256xf32>
    %16 = vector.broadcast %15 : vector<8x1x256xf32> to vector<8x8x256xf32>
    %17 = arith.addf %14, %16 : vector<8x8x256xf32>
    %18 = math.tanh %17 : vector<8x8x256xf32>
    %c0_18 = arith.constant 0 : index
    %c0_19 = arith.constant 0 : index
    %19 = vector.load %arg7[%c0_18, %c0_19] : memref<1x256xf32, #tpu.memory_space<vmem>>, vector<1x256xf32>
    %20 = vector.shape_cast %19 : vector<1x256xf32> to vector<1x1x256xf32>
    %21 = vector.broadcast %20 : vector<1x1x256xf32> to vector<8x8x256xf32>
    %22 = arith.mulf %18, %21 : vector<8x8x256xf32>
    %23 = vector.shape_cast %22 : vector<8x8x256xf32> to vector<64x256xf32>
    %c0_20 = arith.constant 0 : index
    %c0_21 = arith.constant 0 : index
    %24 = vector.load %arg9[%c0_20, %c0_21] : memref<256x16xf32, #tpu.memory_space<vmem>>, vector<256x16xf32>
    %cst_22 = arith.constant dense<0.000000e+00> : vector<64x16xf32>
    %25 = tpu.matmul %23, %24, %cst_22 {dimension_numbers = #tpu.dot_dimension_numbers<[1], [0], [0], [1], [0, 0, 1, 1], [], []>} : vector<64x256xf32>, vector<256x16xf32>, vector<64x16xf32> -> vector<64x16xf32>
    %cst_23 = arith.constant dense<0xFF800000> : vector<64xf32>
    %26 = vector.multi_reduction <maximumf>, %25, %cst_23 [1] : vector<64x16xf32> to vector<64xf32>
    %27 = vector.shape_cast %26 : vector<64xf32> to vector<64x1xf32>
    %28 = vector.broadcast %27 : vector<64x1xf32> to vector<64x16xf32>
    %29 = arith.subf %25, %28 : vector<64x16xf32>
    %30 = math.exp %29 : vector<64x16xf32>
    %cst_24 = arith.constant dense<0.000000e+00> : vector<64xf32>
    %31 = vector.multi_reduction <add>, %30, %cst_24 [1] : vector<64x16xf32> to vector<64xf32>
    %32 = vector.shape_cast %31 : vector<64xf32> to vector<64x1xf32>
    %33 = vector.broadcast %32 : vector<64x1xf32> to vector<64x16xf32>
    %34 = arith.divf %30, %33 : vector<64x16xf32>
    %35 = vector.shape_cast %25 : vector<64x16xf32> to vector<8x8x16xf32>
    %c0_25 = arith.constant 0 : index
    %c0_26 = arith.constant 0 : index
    %c0_27 = arith.constant 0 : index
    %36 = vector.load %arg12[%c0_25, %c0_26, %c0_27] : memref<8x8x16xf32, #tpu.memory_space<vmem>>, vector<8x8x16xf32>
    tpu.vector_store %arg12[%c0_25, %c0_26, %c0_27], %35 {strides = array<i32>} : memref<8x8x16xf32, #tpu.memory_space<vmem>>, vector<8x8x16xf32>,
    %37 = vector.shape_cast %34 : vector<64x16xf32> to vector<8x8x16xf32>
    %c0_28 = arith.constant 0 : index
    %c0_29 = arith.constant 0 : index
    %c0_30 = arith.constant 0 : index
    %38 = vector.load %arg11[%c0_28, %c0_29, %c0_30] : memref<8x8x16xf32, #tpu.memory_space<vmem>>, vector<8x8x16xf32>
    tpu.vector_store %arg11[%c0_28, %c0_29, %c0_30], %37 {strides = array<i32>} : memref<8x8x16xf32, #tpu.memory_space<vmem>>, vector<8x8x16xf32>,
    %39 = vector.shape_cast %34 : vector<64x16xf32> to vector<8x8x16xf32>
    "tpu.trace_start"() <{level = 10 : i32, message = "bpv,bvf->bpf"}> : () -> ()
    %cst_31 = arith.constant dense<0.000000e+00> : vector<8x8x64xf32>
    %40 = tpu.matmul %39, %1, %cst_31 {dimension_numbers = #tpu.dot_dimension_numbers<[2], [1], [1], [2], [0, 0, 0, 1, 1, 2], [0], [0]>} : vector<8x8x16xf32>, vector<8x16x64xf32>, vector<8x8x64xf32> -> vector<8x8x64xf32>
    "tpu.trace_stop"() : () -> ()
    %c0_32 = arith.constant 0 : index
    %c0_33 = arith.constant 0 : index
    %c0_34 = arith.constant 0 : index
    %41 = vector.load %arg10[%c0_32, %c0_33, %c0_34] : memref<8x8x64xf32, #tpu.memory_space<vmem>>, vector<8x8x64xf32>
    tpu.vector_store %arg10[%c0_32, %c0_33, %c0_34], %40 {strides = array<i32>} : memref<8x8x64xf32, #tpu.memory_space<vmem>>, vector<8x8x64xf32>,
    return
  }
  func.func @transform_0(%arg0: i32) -> (i32, i32, i32) {
    %c0_i32 = arith.constant 0 : i32
    %c0_i32_0 = arith.constant 0 : i32
    %c0_i32_1 = arith.constant 0 : i32
    return %arg0, %c0_i32, %c0_i32_0 : i32, i32, i32
  }
  func.func @transform_1(%arg0: i32) -> (i32, i32, i32) {
    %c0_i32 = arith.constant 0 : i32
    %c0_i32_0 = arith.constant 0 : i32
    %c0_i32_1 = arith.constant 0 : i32
    return %arg0, %c0_i32, %c0_i32_0 : i32, i32, i32
  }
  func.func @transform_2(%arg0: i32) -> (i32, i32, i32) {
    %c0_i32 = arith.constant 0 : i32
    %c0_i32_0 = arith.constant 0 : i32
    %c0_i32_1 = arith.constant 0 : i32
    return %arg0, %c0_i32, %c0_i32_0 : i32, i32, i32
  }
  func.func @transform_3(%arg0: i32) -> (i32, i32) {
    %c0_i32 = arith.constant 0 : i32
    %c0_i32_0 = arith.constant 0 : i32
    %c0_i32_1 = arith.constant 0 : i32
    return %c0_i32, %c0_i32_0 : i32, i32
  }
  func.func @transform_4(%arg0: i32) -> (i32, i32) {
    %c0_i32 = arith.constant 0 : i32
    %c0_i32_0 = arith.constant 0 : i32
    %c0_i32_1 = arith.constant 0 : i32
    return %c0_i32, %c0_i32_0 : i32, i32
  }
  func.func @transform_5(%arg0: i32) -> (i32, i32) {
    %c0_i32 = arith.constant 0 : i32
    %c0_i32_0 = arith.constant 0 : i32
    %c0_i32_1 = arith.constant 0 : i32
    return %c0_i32, %c0_i32_0 : i32, i32
  }
  func.func @transform_6(%arg0: i32) -> (i32, i32) {
    %c0_i32 = arith.constant 0 : i32
    %c0_i32_0 = arith.constant 0 : i32
    %c0_i32_1 = arith.constant 0 : i32
    return %c0_i32, %c0_i32_0 : i32, i32
  }
  func.func @transform_7(%arg0: i32) -> (i32, i32) {
    %c0_i32 = arith.constant 0 : i32
    %c0_i32_0 = arith.constant 0 : i32
    %c0_i32_1 = arith.constant 0 : i32
    return %c0_i32, %c0_i32_0 : i32, i32
  }
  func.func @transform_8(%arg0: i32) -> (i32, i32) {
    %c0_i32 = arith.constant 0 : i32
    %c0_i32_0 = arith.constant 0 : i32
    %c0_i32_1 = arith.constant 0 : i32
    return %c0_i32, %c0_i32_0 : i32, i32
  }
  func.func @transform_9(%arg0: i32) -> (i32, i32, i32) {
    %c0_i32 = arith.constant 0 : i32
    %c0_i32_0 = arith.constant 0 : i32
    %c0_i32_1 = arith.constant 0 : i32
    return %arg0, %c0_i32, %c0_i32_0 : i32, i32, i32
  }
  func.func @transform_10(%arg0: i32) -> (i32, i32, i32) {
    %c0_i32 = arith.constant 0 : i32
    %c0_i32_0 = arith.constant 0 : i32
    %c0_i32_1 = arith.constant 0 : i32
    return %arg0, %c0_i32, %c0_i32_0 : i32, i32, i32
  }
  func.func @transform_11(%arg0: i32) -> (i32, i32, i32) {
    %c0_i32 = arith.constant 0 : i32
    %c0_i32_0 = arith.constant 0 : i32
    %c0_i32_1 = arith.constant 0 : i32
    return %arg0, %c0_i32, %c0_i32_0 : i32, i32, i32
  }
}

</mosaic_0001>

<bundles_post_ra>
// kernel: tpu_custom_call.1
= control target key start
LH: loop header
LB: loop body
LE: loop exit
PB: predicated region body
PF: predicated region fallthrough
CT: control target
= control target key end

     0   :  { %17 = vsyncpa [#allocation3], 0  ;;  %s3452_s0 = inlined_call_operand.vmem [shape: f32[8,8,32], index: 0, kind: input, shape index: {}]   ;;  %s3453_s1 = inlined_call_operand.vmem [shape: f32[8,16,64], index: 1, kind: input, shape index: {}]   ;;  %s3454_s2 = inlined_call_operand.vmem [shape: f32[8,1,1024], index: 2, kind: input, shape index: {}]   ;;  %s3455_s3 = inlined_call_operand.vmem [shape: f32[32,16], index: 3, kind: input, shape index: {}]   ;;  %s3456_s4 = inlined_call_operand.hbm [shape: f32[1024,256], index: 4, kind: input, shape index: {}]   ;;  %s3457_s5 = inlined_call_operand.vmem [shape: f32[1,16], index: 5, kind: input, shape index: {}]   ;;  %s3458_s6 = inlined_call_operand.vmem [shape: f32[1,256], index: 6, kind: input, shape index: {}]   ;;  %s3459_s7 = inlined_call_operand.vmem [shape: f32[16,256], index: 7, kind: input, shape index: {}]   ;;  %s3460_s8 = inlined_call_operand.vmem [shape: f32[256,16], index: 8, kind: input, shape index: {}]   ;;  %s3461_s9 = inlined_call_operand.hbm [shape: f32[8,8,64], index: 9, kind: output, shape index: {0}]   ;;  %s3462_s10 = inlined_call_operand.hbm [shape: f32[8,8,16], index: 10, kind: output, shape index: {1}]   ;;  %s3463_s11 = inlined_call_operand.hbm [shape: f32[8,8,16], index: 11, kind: output, shape index: {2}]  }
   0x1   :  { %18 = vsyncpa [#allocation4], 0 }
   0x2   :  { %19 = vsyncpa [#allocation7], 0  ;;  %s2837_s17 = smov [#allocation2]   ;;  %s2743_s21 = scalar_lea.hbm %s3456_s4, 32768 }
   0x3   :  { %s33_s18 = sshll.u32 %s2837_s17, 4  ;;  %p2744_p0 = scmp.ne.s32.totalorder %s3456_s4, %s2743_s21  ;;  %s34_s18 = int_to_ptr.vmem [resolvable:$true] %s33_s18 }
   0x4   :  { %p2747_p1 = scmp.lt.u32.totalorder %s2743_s21, %s3456_s4 }
   0x6   :  { %p2749_p2 = pnand %p2747_p1, %p2744_p0 }
   0x8   :  { %2752 = shalt.err (!%p2749_p2)
}
   0x9   :  { %s2753_s26 = scalar_lea.vmem %s34_s18, 32768  ;;  %p2758_p4 = scmp.lt.s32.totalorder %s34_s18, %s34_s18 }
   0xa   :  { %p2754_p3 = scmp.ne.s32.totalorder %s34_s18, %s2753_s26  ;;  %p2759_p5 = scmp.lt.s32.totalorder %s2753_s26, %s2753_s26 }
   0xc   :  { %p2760_p6 = por %p2759_p5, %p2758_p4 }
   0xe   :  { %p2761_p7 = pnand %p2760_p6, %p2754_p3 }
  0x10   :  { %2764 = shalt.err (!%p2761_p7)
}
  0x11   :  { %s2838_s27 = smov 256   ;;  %s2839_s28 = smov 16  }
  0x12   :  { %39 = dma.hbm_to_vmem [thread:$0]  %s3456_s4, 32768, %s34_s18, [#allocation3], %s2838_s27, %s2838_s27, %s2839_s28  }
  0x13   :  { %2831 = dma.done.wait [#allocation3], 32768  }
  0x14   :  { %2832 = vsyncadd [#allocation3], 4294934528  ;;  %v75_v0 = vld [vmem:[%s3455_s3] sm:$0xff]  ;;  %v76_v1 = vld [vmem:[%s3455_s3 + $0x8] sm:$0xff]  ;;  %vm86_vm0 = vcmask 261120   ;;  %v499_v50 = vlaneseq  ;;  %vm920_vm1 = vcmask 130048  }
  0x15   :  { %v289_v2 = vld [vmem:[#allocation2 + $0x208] sm:$0xff]  ;;  %v2325_v3 = vpack.c.bf16 %v76_v1, %v75_v0  ;;  %v291_v4 = vld [vmem:[#allocation2 + $0x218] sm:$0xff]  ;;  %v288_v5 = vld [vmem:[#allocation2 + $0x200] sm:$0xff]  ;;  %v2840_v48 = vmov 1966171168   ;;  %vm2843_vm2 = vmmov 0  }
  0x16   :  { %v290_v6 = vld [vmem:[#allocation2 + $0x210] sm:$0xff]  ;;  %v2397_v7 = vpack.c.bf16 %v291_v4, %v289_v2  ;;  %v78_v10 = vld [vmem:[%s3455_s3 + $0x18] sm:$0xff]  ;;  %v293_v11 = vld [vmem:[#allocation2 + $0x228] sm:$0xff]  ;;  %v497_v49 = vunpack.c.l.s4 %v2840_v48  ;;  %v2964_v59 = vshrl.u32 %v499_v50, 7 }
  0x17   :  { %v2399_v8 = vpack.c.bf16 %v290_v6, %v288_v5  ;;  %v77_v9 = vld [vmem:[%s3455_s3 + $0x10] sm:$0xff]  ;;  %2326 = vmatprep.subr.bf16.mxu0 %v2325_v3  ;;  %v295_v13 = vld [vmem:[#allocation2 + $0x238] sm:$0xff]  ;;  %v292_v14 = vld [vmem:[#allocation2 + $0x220] sm:$0xff] }
  0x18   :  { %v2329_v12 = vpack.c.bf16 %v78_v10, %v77_v9  ;;  %v294_v15 = vld [vmem:[#allocation2 + $0x230] sm:$0xff]  ;;  %2398 = vmatprep.subr.bf16.mxu1 %v2397_v7  ;;  %2328 = vmatpush3.bf16.msra.mxu0 %v2325_v3  ;;  %v2401_v16 = vpack.c.bf16 %v295_v13, %v293_v11  ;;  %v51_v17 = vld [vmem:[%s3452_s0] sm:$0xff]  ;;  %v297_v18 = vld [vmem:[#allocation2 + $0x248] sm:$0xff]  ;;  %v498_v58 = vunpack.c.0.s8 %v497_v49 }
  0x19   :  { %2400 = vmatpush1.bf16.msra.mxu1 %v2399_v8  ;;  %v2403_v19 = vpack.c.bf16 %v294_v15, %v292_v14  ;;  %v299_v20 = vld [vmem:[#allocation2 + $0x258] sm:$0xff]  ;;  %2257 = vmatprep.mubr.msk.f32.mxu0 %vm86_vm0, %v51_v17  ;;  %v296_v22 = vld [vmem:[#allocation2 + $0x240] sm:$0xff]  ;;  %v298_v23 = vld [vmem:[#allocation2 + $0x250] sm:$0xff] }
  0x1a   :  { %2330 = vmatprep.subr.bf16.mxu0 %v2329_v12  ;;  %2402 = vmatprep.subr.bf16.mxu1 %v2401_v16  ;;  %v2405_v21 = vpack.c.bf16 %v299_v20, %v297_v18  ;;  %v301_v24 = vld [vmem:[#allocation2 + $0x268] sm:$0xff]  ;;  %v303_v25 = vld [vmem:[#allocation2 + $0x278] sm:$0xff]  ;;  %v2407_v27 = vpack.c.bf16 %v298_v23, %v296_v22  ;;  %v53_v28 = vld [vmem:[%s3452_s0 + $0x10] sm:$0xff]  ;;  %v2968_v4 = vsub.s32 %v498_v58, %v2964_v59 }
  0x1b   :  { %v52_v26 = vld [vmem:[%s3452_s0 + $0x8] sm:$0xff]  ;;  %v2409_v29 = vpack.c.bf16 %v303_v25, %v301_v24  ;;  %v300_v30 = vld [vmem:[#allocation2 + $0x260] sm:$0xff]  ;;  %v302_v31 = vld [vmem:[#allocation2 + $0x270] sm:$0xff] }
  0x1c   :  { %2332 = vmatpush3.bf16.msra.mxu0 %v2329_v12  ;;  %v305_v32 = vld [vmem:[#allocation2 + $0x288] sm:$0xff]  ;;  %v307_v33 = vld [vmem:[#allocation2 + $0x298] sm:$0xff]  ;;  %v2411_v35 = vpack.c.bf16 %v302_v31, %v300_v30  ;;  %v55_v36 = vld [vmem:[%s3452_s0 + $0x20] sm:$0xff] }
  0x1d   :  { %2404 = vmatpush1.bf16.msra.mxu1 %v2403_v19  ;;  %v54_v34 = vld [vmem:[%s3452_s0 + $0x18] sm:$0xff]  ;;  %v2413_v37 = vpack.c.bf16 %v307_v33, %v305_v32  ;;  %v304_v38 = vld [vmem:[#allocation2 + $0x280] sm:$0xff]  ;;  %v306_v39 = vld [vmem:[#allocation2 + $0x290] sm:$0xff] }
  0x1e   :  { %2406 = vmatprep.subr.bf16.mxu1 %v2405_v21  ;;  %v309_v40 = vld [vmem:[#allocation2 + $0x2a8] sm:$0xff]  ;;  %v311_v41 = vld [vmem:[#allocation2 + $0x2b8] sm:$0xff]  ;;  %v2415_v43 = vpack.c.bf16 %v306_v39, %v304_v38  ;;  %v57_v44 = vld [vmem:[%s3452_s0 + $0x30] sm:$0xff] }
  0x1f   :  { %2258 = vmatmul.mubr.msk.f32.vlgmr.msra.gmra.mrb[0].mxu0 %vm86_vm0, %v52_v26  ;;  %v56_v42 = vld [vmem:[%s3452_s0 + $0x28] sm:$0xff]  ;;  %v2417_v45 = vpack.c.bf16 %v311_v41, %v309_v40  ;;  %v308_v46 = vld [vmem:[#allocation2 + $0x2a0] sm:$0xff]  ;;  %v310_v47 = vld [vmem:[#allocation2 + $0x2b0] sm:$0xff] }
  0x20   :  { %2260 = vmatprep.mubr.msk.f32.mxu0 %vm86_vm0, %v53_v28  ;;  %v313_v51 = vld [vmem:[#allocation2 + $0x2c8] sm:$0xff]  ;;  %v315_v52 = vld [vmem:[#allocation2 + $0x2d8] sm:$0xff]  ;;  %v2419_v54 = vpack.c.bf16 %v310_v47, %v308_v46  ;;  %v312_v56 = vld [vmem:[#allocation2 + $0x2c0] sm:$0xff] }
  0x21   :  { %2408 = vmatpush1.bf16.msra.mxu1 %v2407_v27  ;;  %v58_v53 = vld [vmem:[%s3452_s0 + $0x38] sm:$0xff]  ;;  %v2421_v55 = vpack.c.bf16 %v315_v52, %v313_v51  ;;  %v314_v57 = vld [vmem:[#allocation2 + $0x2d0] sm:$0xff]  ;;  %v317_v60 = vld [vmem:[#allocation2 + $0x2e8] sm:$0xff] }
  0x22   :  { %2410 = vmatprep.subr.bf16.mxu1 %v2409_v29  ;;  %v319_v61 = vld [vmem:[#allocation2 + $0x2f8] sm:$0xff]  ;;  %v316_v62 = vld [vmem:[#allocation2 + $0x2e0] sm:$0xff]  ;;  %v318_v63 = vld [vmem:[#allocation2 + $0x2f0] sm:$0xff]  ;;  %v2423_v0 = vpack.c.bf16 %v314_v57, %v312_v56 }
  0x23   :  { %2261 = vmatmul.mubr.msk.f32.gmra.mrb[2].mxu0 %vm86_vm0, %v54_v34  ;;  %v321_v1 = vld [vmem:[#allocation2 + $0x308] sm:$0xff]  ;;  %v323_v2 = vld [vmem:[#allocation2 + $0x318] sm:$0xff]  ;;  %v2425_v3 = vpack.c.bf16 %v319_v61, %v317_v60  ;;  %v320_v5 = vld [vmem:[#allocation2 + $0x300] sm:$0xff]  ;;  %v2427_v8 = vpack.c.bf16 %v318_v63, %v316_v62 }
  0x24   :  { %2263 = vmatprep.mubr.msk.f32.mxu0 %vm86_vm0, %v55_v36  ;;  %v2667_v6 = vld [vmem:[%s3454_s2] ss:$8 sps:$4 sm:$0xff]   ;;  %v2670_v7 = vld [vmem:[%s3454_s2 + $0x10] ss:$8 sps:$4 sm:$0xff]   ;;  %v2669_v9 = vld [vmem:[%s3454_s2 + $0x4] ss:$8 sps:$4 sm:$0xff]   ;;  %v2429_v12 = vpack.c.bf16 %v323_v2, %v321_v1 }
  0x25   :  { %2412 = vmatpush1.bf16.msra.mxu1 %v2411_v35  ;;  %v2672_v10 = vld [vmem:[%s3454_s2 + $0x14] ss:$8 sps:$4 sm:$0xff]   ;;  %v2673_v11 = vld [vmem:[%s3454_s2 + $0x20] ss:$8 sps:$4 sm:$0xff]   ;;  %v2676_v15 = vld [vmem:[%s3454_s2 + $0x30] ss:$8 sps:$4 sm:$0xff]   ;;  %v2989_v16 = vrot.slane %v2667_v6, %v2968_v4  ;;  %v2992_v17 = vrot.slane %v2670_v7, %v2968_v4  ;;  %v3009_v25 = vrot.slane %v2669_v9, %v2968_v4 }
  0x26   :  { %2414 = vmatprep.subr.bf16.mxu1 %v2413_v37  ;;  %v322_v13 = vld [vmem:[#allocation2 + $0x310] sm:$0xff]  ;;  %v325_v14 = vld [vmem:[#allocation2 + $0x328] sm:$0xff]  ;;  %v327_v18 = vld [vmem:[#allocation2 + $0x338] sm:$0xff]  ;;  %v3001_v21 = vrot.slane %v2673_v11, %v2968_v4  ;;  %v3004_v22 = vrot.slane %v2676_v15, %v2968_v4  ;;  %v3012_v26 = vrot.slane %v2672_v10, %v2968_v4 }
  0x27   :  { %2264 = vmatmul.mubr.msk.f32.gmra.mrb[4].mxu0 %vm86_vm0, %v56_v42  ;;  %v2675_v19 = vld [vmem:[%s3454_s2 + $0x24] ss:$8 sps:$4 sm:$0xff]   ;;  %v2678_v20 = vld [vmem:[%s3454_s2 + $0x34] ss:$8 sps:$4 sm:$0xff]   ;;  %v553_v23 = vcombine.high %v2989_v16, %v2992_v17  ;;  %v2431_v24 = vpack.c.bf16 %v322_v13, %v320_v5  ;;  %v2433_v27 = vpack.c.bf16 %v327_v18, %v325_v14 }
  0x28   :  { %2266 = vmatprep.mubr.msk.f32.mxu0 %vm86_vm0, %v57_v44  ;;  %v324_v28 = vld [vmem:[#allocation2 + $0x320] sm:$0xff]  ;;  %v326_v29 = vld [vmem:[#allocation2 + $0x330] sm:$0xff]  ;;  %v557_v30 = vcombine.high %v3001_v21, %v3004_v22  ;;  %v329_v32 = vld [vmem:[#allocation2 + $0x348] sm:$0xff]  ;;  %v3020_v34 = vrot.slane %v2675_v19, %v2968_v4  ;;  %v3023_v35 = vrot.slane %v2678_v20, %v2968_v4  ;;  %v554_v38 = vcombine.low %v3009_v25, %v3012_v26 }
  0x29   :  { %2416 = vmatpush1.bf16.msra.mxu1 %v2415_v43  ;;  %v3017_v31 = vrot.slane %v553_v23, %v2968_v4  ;;  %v331_v33 = vld [vmem:[#allocation2 + $0x358] sm:$0xff]  ;;  %v2435_v37 = vpack.c.bf16 %v326_v29, %v324_v28  ;;  %v328_v40 = vld [vmem:[#allocation2 + $0x340] sm:$0xff]  ;;  %v330_v41 = vld [vmem:[#allocation2 + $0x350] sm:$0xff] }
  0x2a   :  { %2418 = vmatprep.subr.bf16.mxu1 %v2417_v45  ;;  %v3026_v36 = vrot.slane %v557_v30, %v2968_v4  ;;  %v2437_v39 = vpack.c.bf16 %v331_v33, %v329_v32  ;;  %v333_v43 = vld [vmem:[#allocation2 + $0x368] sm:$0xff]  ;;  %v335_v44 = vld [vmem:[#allocation2 + $0x378] sm:$0xff]  ;;  %v558_v45 = vcombine.low %v3020_v34, %v3023_v35  ;;  %v3035_v46 = vrot.slane %v554_v38, %v2968_v4  ;;  %v332_v50 = vld [vmem:[#allocation2 + $0x360] sm:$0xff] }
  0x2b   :  { %2267 = vmatmul.mubr.msk.f32.gmra.mrb[6].mxu0 %vm86_vm0, %v58_v53  ;;  %v2439_v47 = vpack.c.bf16 %v330_v41, %v328_v40  ;;  %v2441_v49 = vpack.c.bf16 %v335_v44, %v333_v43  ;;  %v334_v51 = vld [vmem:[#allocation2 + $0x370] sm:$0xff]  ;;  %v337_v52 = vld [vmem:[#allocation2 + $0x388] sm:$0xff]  ;;  %v339_v53 = vld [vmem:[#allocation2 + $0x398] sm:$0xff]  ;;  %v559_v38 = vcombine.high %v3020_v34, %v3023_v35 }
  0x2c   :  { %v621_v42 = vcombine.high %v3017_v31, %v3026_v36  ;;  %v3038_v48 = vrot.slane %v558_v45, %v2968_v4  ;;  %v2445_v56 = vpack.c.bf16 %v339_v53, %v337_v52  ;;  %v336_v57 = vld [vmem:[#allocation2 + $0x380] sm:$0xff]  ;;  %v338_v58 = vld [vmem:[#allocation2 + $0x390] sm:$0xff]  ;;  %v341_v60 = vld [vmem:[#allocation2 + $0x3a8] sm:$0xff] }
  0x2d   :  { %2420 = vmatpush1.bf16.msra.mxu1 %v2419_v54  ;;  %v343_v61 = vld [vmem:[#allocation2 + $0x3b8] sm:$0xff]  ;;  %v2447_v62 = vpack.c.bf16 %v338_v58, %v336_v57  ;;  %v342_v1 = vld [vmem:[#allocation2 + $0x3b0] sm:$0xff]  ;;  %v345_v2 = vld [vmem:[#allocation2 + $0x3c8] sm:$0xff] }
  0x2e   :  { %2422 = vmatprep.subr.bf16.mxu1 %v2421_v55  ;;  %767 = vmatprep.mubr.f32.mxu1 %v621_v42  ;;  %v618_v54 = vcombine.low %v3035_v46, %v3038_v48  ;;  %v2443_v55 = vpack.c.bf16 %v334_v51, %v332_v50  ;;  %v2449_v63 = vpack.c.bf16 %v343_v61, %v341_v60  ;;  %v225_v5 = vld [vmem:[#allocation2 + $0x8] sm:$0xff]  ;;  %v227_v6 = vld [vmem:[#allocation2 + $0x18] sm:$0xff]  ;;  %v224_v9 = vld [vmem:[#allocation2] sm:$0xff] }
  0x2f   :  { %v226_v10 = vld [vmem:[#allocation2 + $0x10] sm:$0xff]  ;;  %v229_v15 = vld [vmem:[#allocation2 + $0x28] sm:$0xff]  ;;  %v351_v19 = vld [vmem:[#allocation2 + $0x3f8] sm:$0xff]  ;;  %v3060_v51 = vrot.slane %v559_v38, %v2968_v4 }
  0x30   :  { %v346_v13 = vld [vmem:[#allocation2 + $0x3d0] sm:$0xff]  ;;  %v2335_v14 = vpack.c.bf16 %v226_v10, %v224_v9  ;;  %v349_v18 = vld [vmem:[#allocation2 + $0x3e8] sm:$0xff]  ;;  %v231_v20 = vld [vmem:[#allocation2 + $0x38] sm:$0xff] }
  0x31   :  { %2424 = vmatpush1.bf16.msra.mxu1 %v2423_v0  ;;  %v340_v0 = vld [vmem:[#allocation2 + $0x3a0] sm:$0xff]  ;;  %v2337_v28 = vpack.c.bf16 %v231_v20, %v229_v15  ;;  %v230_v30 = vld [vmem:[#allocation2 + $0x30] sm:$0xff]  ;;  %v233_v40 = vld [vmem:[#allocation2 + $0x48] sm:$0xff] }
  0x32   :  { %2426 = vmatprep.subr.bf16.mxu1 %v2425_v3  ;;  %v347_v3 = vld [vmem:[#allocation2 + $0x3d8] sm:$0xff]  ;;  %v2451_v7 = vpack.c.bf16 %v342_v1, %v340_v0  ;;  %v348_v23 = vld [vmem:[#allocation2 + $0x3e0] sm:$0xff]  ;;  %v350_v33 = vld [vmem:[#allocation2 + $0x3f0] sm:$0xff] }
  0x33   :  { %v2453_v11 = vpack.c.bf16 %v347_v3, %v345_v2  ;;  %v228_v29 = vld [vmem:[#allocation2 + $0x20] sm:$0xff]  ;;  %v235_v41 = vld [vmem:[#allocation2 + $0x58] sm:$0xff]  ;;  %v234_v43 = vld [vmem:[#allocation2 + $0x50] sm:$0xff]  ;;  %v2459_v44 = vpack.c.bf16 %v350_v33, %v348_v23 }
  0x34   :  { %v355_v42 = vld [vmem:[#allocation2 + $0x418] sm:$0xff]  ;;  %v237_v35 = vld [vmem:[#allocation2 + $0x68] sm:$0xff]  ;;  %v236_v53 = vld [vmem:[#allocation2 + $0x60] sm:$0xff] }
  0x35   :  { %2428 = vmatpush1.bf16.msra.mxu1 %v2427_v8  ;;  %v2333_v8 = vpack.c.bf16 %v227_v6, %v225_v5  ;;  %v357_v57 = vld [vmem:[#allocation2 + $0x428] sm:$0xff]  ;;  %v359_v58 = vld [vmem:[#allocation2 + $0x438] sm:$0xff]  ;;  %v356_v1 = vld [vmem:[#allocation2 + $0x420] sm:$0xff]  ;;  %v620_v6 = vcombine.low %v3017_v31, %v3026_v36 }
  0x36   :  { %2430 = vmatprep.subr.bf16.mxu1 %v2429_v12  ;;  %v344_v12 = vld [vmem:[#allocation2 + $0x3c0] sm:$0xff]  ;;  %v241_v60 = vld [vmem:[#allocation2 + $0x88] sm:$0xff]  ;;  %v243_v61 = vld [vmem:[#allocation2 + $0x98] sm:$0xff] }
  0x37   :  { %2334 = vmatprep.subr.bf16.mxu0 %v2333_v8  ;;  %v2455_v32 = vpack.c.bf16 %v346_v13, %v344_v12  ;;  %v240_v3 = vld [vmem:[#allocation2 + $0x80] sm:$0xff]  ;;  %v242_v5 = vld [vmem:[#allocation2 + $0x90] sm:$0xff]  ;;  %v2465_v8 = vpack.c.bf16 %v359_v58, %v357_v57  ;;  %v2349_v10 = vpack.c.bf16 %v243_v61, %v241_v60  ;;  %v247_v12 = vld [vmem:[#allocation2 + $0xb8] sm:$0xff]  ;;  %v619_v13 = vcombine.high %v3035_v46, %v3038_v48 }
  0x38   :  { %2336 = vmatpush1.bf16.msra.mxu0 %v2335_v14  ;;  %v358_v9 = vld [vmem:[#allocation2 + $0x430] sm:$0xff]  ;;  %v361_v14 = vld [vmem:[#allocation2 + $0x448] sm:$0xff]  ;;  %v363_v15 = vld [vmem:[#allocation2 + $0x458] sm:$0xff]  ;;  %696 = vmatprep.mubr.f32.mxu0 %v620_v6 }
  0x39   :  { %2432 = vmatpush1.bf16.msra.mxu1 %v2431_v24  ;;  %v552_v24 = vcombine.low %v2989_v16, %v2992_v17  ;;  %v2457_v16 = vpack.c.bf16 %v351_v19, %v349_v18  ;;  %2338 = vmatprep.subr.bf16.mxu0 %v2337_v28  ;;  %v2341_v17 = vpack.c.bf16 %v235_v41, %v233_v40  ;;  %v360_v36 = vld [vmem:[#allocation2 + $0x440] sm:$0xff]  ;;  %v246_v23 = vld [vmem:[#allocation2 + $0xb0] sm:$0xff]  ;;  %v249_v28 = vld [vmem:[#allocation2 + $0xc8] sm:$0xff] }
  0x3a   :  { %2434 = vmatprep.subr.bf16.mxu1 %v2433_v27  ;;  %v556_v27 = vcombine.low %v3001_v21, %v3004_v22  ;;  %v232_v21 = vld [vmem:[#allocation2 + $0x40] sm:$0xff]  ;;  %v353_v22 = vld [vmem:[#allocation2 + $0x408] sm:$0xff]  ;;  %v2351_v18 = vpack.c.bf16 %v242_v5, %v240_v3  ;;  %v2467_v31 = vpack.c.bf16 %v358_v9, %v356_v1  ;;  %v250_v41 = vld [vmem:[#allocation2 + $0xd0] sm:$0xff] }
  0x3b   :  { %v3051_v45 = vrot.slane %v552_v24, %v2968_v4  ;;  %v2343_v34 = vpack.c.bf16 %v234_v43, %v232_v21  ;;  %v244_v20 = vld [vmem:[#allocation2 + $0xa0] sm:$0xff]  ;;  %v2469_v24 = vpack.c.bf16 %v363_v15, %v361_v14  ;;  %v253_v21 = vld [vmem:[#allocation2 + $0xe8] sm:$0xff]  ;;  %v371_v43 = vld [vmem:[#allocation2 + $0x498] sm:$0xff] }
  0x3c   :  { %v2355_v33 = vpack.c.bf16 %v246_v23, %v244_v20  ;;  %v364_v38 = vld [vmem:[#allocation2 + $0x460] sm:$0xff]  ;;  %v373_v57 = vld [vmem:[#allocation2 + $0x4a8] sm:$0xff]  ;;  %v375_v58 = vld [vmem:[#allocation2 + $0x4b8] sm:$0xff] }
  0x3d   :  { %2436 = vmatpush1.bf16.msra.mxu1 %v2435_v37  ;;  %v555_v37 = vcombine.high %v3009_v25, %v3012_v26  ;;  %v3054_v25 = vrot.slane %v556_v27, %v2968_v4  ;;  %v352_v26 = vld [vmem:[#allocation2 + $0x400] sm:$0xff]  ;;  %v362_v27 = vld [vmem:[#allocation2 + $0x450] sm:$0xff]  ;;  %v261_v5 = vld [vmem:[#allocation2 + $0x128] sm:$0xff] }
  0x3e   :  { %2438 = vmatprep.subr.bf16.mxu1 %v2437_v39  ;;  %v2339_v39 = vpack.c.bf16 %v230_v30, %v228_v29  ;;  %v251_v29 = vld [vmem:[#allocation2 + $0xd8] sm:$0xff]  ;;  %v365_v30 = vld [vmem:[#allocation2 + $0x468] sm:$0xff]  ;;  %v248_v40 = vld [vmem:[#allocation2 + $0xc0] sm:$0xff] }
  0x3f   :  { %v3057_v50 = vrot.slane %v555_v37, %v2968_v4  ;;  %v2471_v37 = vpack.c.bf16 %v362_v27, %v360_v36  ;;  %v258_v1 = vld [vmem:[#allocation2 + $0x110] sm:$0xff]  ;;  %v263_v6 = vld [vmem:[#allocation2 + $0x138] sm:$0xff]  ;;  %v260_v15 = vld [vmem:[#allocation2 + $0x120] sm:$0xff] }
  0x40   :  { %2340 = vmatpush1.bf16.msra.mxu0 %v2339_v39  ;;  %v2357_v39 = vpack.c.bf16 %v251_v29, %v249_v28  ;;  %v374_v3 = vld [vmem:[#allocation2 + $0x4b0] sm:$0xff]  ;;  %v379_v9 = vld [vmem:[#allocation2 + $0x4d8] sm:$0xff]  ;;  %v2369_v14 = vpack.c.bf16 %v263_v6, %v261_v5  ;;  %v381_v23 = vld [vmem:[#allocation2 + $0x4e8] sm:$0xff] }
  0x41   :  { %2440 = vmatpush1.bf16.msra.mxu1 %v2439_v47  ;;  %v239_v47 = vld [vmem:[#allocation2 + $0x78] sm:$0xff]  ;;  %2342 = vmatprep.subr.bf16.mxu0 %v2341_v17  ;;  %v622_v2 = vcombine.low %v3057_v50, %v3060_v51  ;;  %v366_v17 = vld [vmem:[#allocation2 + $0x470] sm:$0xff]  ;;  %v380_v29 = vld [vmem:[#allocation2 + $0x4e0] sm:$0xff] }
  0x42   :  { %2442 = vmatprep.subr.bf16.mxu1 %v2441_v49  ;;  %v354_v49 = vld [vmem:[#allocation2 + $0x410] sm:$0xff]  ;;  %v2345_v52 = vpack.c.bf16 %v239_v47, %v237_v35  ;;  %v252_v47 = vld [vmem:[#allocation2 + $0xe0] sm:$0xff]  ;;  %v267_v20 = vld [vmem:[#allocation2 + $0x158] sm:$0xff] }
  0x43   :  { %v378_v36 = vld [vmem:[#allocation2 + $0x4d0] sm:$0xff]  ;;  %v392_v6 = vld [vmem:[#allocation2 + $0x540] sm:$0xff] }
  0x44   :  { %2344 = vmatpush1.bf16.msra.mxu0 %v2343_v34  ;;  %v368_v34 = vld [vmem:[#allocation2 + $0x480] sm:$0xff] }
  0x45   :  { %2444 = vmatpush1.bf16.msra.mxu1 %v2443_v55  ;;  %v238_v55 = vld [vmem:[#allocation2 + $0x70] sm:$0xff]  ;;  %2346 = vmatprep.subr.bf16.mxu0 %v2345_v52 }
  0x46   :  { %2446 = vmatprep.subr.bf16.mxu1 %v2445_v56  ;;  %v2461_v56 = vpack.c.bf16 %v355_v42, %v353_v22  ;;  %v2347_v0 = vpack.c.bf16 %v238_v55, %v236_v53  ;;  %v255_v22 = vld [vmem:[#allocation2 + $0xf8] sm:$0xff]  ;;  %v369_v42 = vld [vmem:[#allocation2 + $0x488] sm:$0xff]  ;;  %v370_v53 = vld [vmem:[#allocation2 + $0x490] sm:$0xff] }
  0x47   :  { %v2361_v35 = vpack.c.bf16 %v255_v22, %v253_v21  ;;  %v2477_v52 = vpack.c.bf16 %v371_v43, %v369_v42  ;;  %v257_v55 = vld [vmem:[#allocation2 + $0x108] sm:$0xff]  ;;  %v2479_v61 = vpack.c.bf16 %v370_v53, %v368_v34  ;;  %v384_v22 = vld [vmem:[#allocation2 + $0x500] sm:$0xff]  ;;  %v386_v34 = vld [vmem:[#allocation2 + $0x510] sm:$0xff] }
  0x48   :  { %2348 = vmatpush1.bf16.msra.mxu0 %v2347_v0  ;;  %v256_v0 = vld [vmem:[#allocation2 + $0x100] sm:$0xff] }
  0x49   :  { %2448 = vmatpush1.bf16.msra.mxu1 %v2447_v62  ;;  %v617_v62 = vcombine.high %v3051_v45, %v3054_v25  ;;  %2350 = vmatprep.subr.bf16.mxu0 %v2349_v10  ;;  %v2367_v10 = vpack.c.bf16 %v258_v1, %v256_v0  ;;  %v268_v43 = vld [vmem:[#allocation2 + $0x160] sm:$0xff]  ;;  %v279_v0 = vld [vmem:[#allocation2 + $0x1b8] sm:$0xff]  ;;  %v393_v1 = vld [vmem:[#allocation2 + $0x548] sm:$0xff] }
  0x4a   :  { %2450 = vmatprep.subr.bf16.mxu1 %v2449_v63  ;;  %v2463_v63 = vpack.c.bf16 %v354_v49, %v352_v26  ;;  %v2475_v26 = vpack.c.bf16 %v366_v17, %v364_v38  ;;  %v254_v49 = vld [vmem:[#allocation2 + $0xf0] sm:$0xff] }
  0x4b   :  { %v2363_v60 = vpack.c.bf16 %v254_v49, %v252_v47  ;;  %v382_v38 = vld [vmem:[#allocation2 + $0x4f0] sm:$0xff]  ;;  %v275_v47 = vld [vmem:[#allocation2 + $0x198] sm:$0xff]  ;;  %v389_v49 = vld [vmem:[#allocation2 + $0x528] sm:$0xff] }
  0x4c   :  { %2352 = vmatpush1.bf16.msra.mxu0 %v2351_v18  ;;  %v262_v18 = vld [vmem:[#allocation2 + $0x130] sm:$0xff]  ;;  %v2491_v21 = vpack.c.bf16 %v382_v38, %v380_v29 }
  0x4d   :  { %2452 = vmatpush1.bf16.msra.mxu1 %v2451_v7  ;;  %v623_v7 = vcombine.high %v3057_v50, %v3060_v51  ;;  %v2371_v27 = vpack.c.bf16 %v262_v18, %v260_v15  ;;  %v283_v15 = vld [vmem:[#allocation2 + $0x1d8] sm:$0xff]  ;;  %v397_v18 = vld [vmem:[#allocation2 + $0x568] sm:$0xff]  ;;  %v398_v29 = vld [vmem:[#allocation2 + $0x570] sm:$0xff] }
  0x4e   :  { %2454 = vmatprep.subr.bf16.mxu1 %v2453_v11  ;;  %v245_v11 = vld [vmem:[#allocation2 + $0xa8] sm:$0xff]  ;;  %v432_v50 = vld [vmem:[#allocation2 + $0x680] sm:$0xff]  ;;  %v434_v51 = vld [vmem:[#allocation2 + $0x690] sm:$0xff] }
  0x4f   :  { %v2353_v19 = vpack.c.bf16 %v247_v12, %v245_v11  ;;  %v376_v12 = vld [vmem:[#allocation2 + $0x4c0] sm:$0xff] }
  0x50   :  { %v2487_v28 = vpack.c.bf16 %v378_v36, %v376_v12  ;;  %v394_v12 = vld [vmem:[#allocation2 + $0x550] sm:$0xff] }
  0x51   :  { %2456 = vmatpush1.bf16.msra.mxu1 %v2455_v32  ;;  %v367_v32 = vld [vmem:[#allocation2 + $0x478] sm:$0xff]  ;;  %2354 = vmatprep.subr.bf16.mxu0 %v2353_v19  ;;  %v265_v19 = vld [vmem:[#allocation2 + $0x148] sm:$0xff] }
  0x52   :  { %2458 = vmatprep.subr.bf16.mxu1 %v2457_v16  ;;  %v2473_v16 = vpack.c.bf16 %v367_v32, %v365_v30  ;;  %2356 = vmatpush1.bf16.msra.mxu0 %v2355_v33  ;;  %v2373_v30 = vpack.c.bf16 %v267_v20, %v265_v19  ;;  %v264_v32 = vld [vmem:[#allocation2 + $0x140] sm:$0xff]  ;;  %v266_v33 = vld [vmem:[#allocation2 + $0x150] sm:$0xff]  ;;  %v2503_v19 = vpack.c.bf16 %v394_v12, %v392_v6 }
  0x53   :  { %2358 = vmatprep.subr.bf16.mxu0 %v2357_v39  ;;  %v269_v39 = vld [vmem:[#allocation2 + $0x168] sm:$0xff]  ;;  %v2375_v17 = vpack.c.bf16 %v266_v33, %v264_v32  ;;  %v396_v20 = vld [vmem:[#allocation2 + $0x560] sm:$0xff]  ;;  %v287_v32 = vld [vmem:[#allocation2 + $0x1f8] sm:$0xff] }
  0x54   :  { %v401_v33 = vld [vmem:[#allocation2 + $0x588] sm:$0xff]  ;;  %v412_v6 = vld [vmem:[#allocation2 + $0x5e0] sm:$0xff] }
  0x55   :  { %2460 = vmatpush1.bf16.msra.mxu1 %v2459_v44  ;;  %v2359_v44 = vpack.c.bf16 %v250_v41, %v248_v40  ;;  %v271_v40 = vld [vmem:[#allocation2 + $0x178] sm:$0xff]  ;;  %v385_v41 = vld [vmem:[#allocation2 + $0x508] sm:$0xff] }
  0x56   :  { %2462 = vmatprep.subr.bf16.mxu1 %v2461_v56  ;;  %v259_v56 = vld [vmem:[#allocation2 + $0x118] sm:$0xff]  ;;  %v2377_v42 = vpack.c.bf16 %v271_v40, %v269_v39  ;;  %v2507_v39 = vpack.c.bf16 %v398_v29, %v396_v20  ;;  %v400_v40 = vld [vmem:[#allocation2 + $0x580] sm:$0xff] }
  0x57   :  { %2360 = vmatpush1.bf16.msra.mxu0 %v2359_v44  ;;  %v270_v44 = vld [vmem:[#allocation2 + $0x170] sm:$0xff]  ;;  %v420_v20 = vld [vmem:[#allocation2 + $0x620] sm:$0xff] }
  0x58   :  { %768 = vmatmul.mubr.f32.vlgmr.msra.gmra.mrb[0].mxu1 %v617_v62  ;;  %v372_v62 = vld [vmem:[#allocation2 + $0x4a0] sm:$0xff]  ;;  %2362 = vmatprep.subr.bf16.mxu0 %v2361_v35  ;;  %v273_v35 = vld [vmem:[#allocation2 + $0x188] sm:$0xff]  ;;  %v2379_v53 = vpack.c.bf16 %v270_v44, %v268_v43  ;;  %v919_v43 = vld [vmem:[%s3459_s7 + $0x18] sm:$0xff] }
  0x59   :  { %2464 = vmatpush1.bf16.msra.mxu1 %v2463_v63  ;;  %838 = vmatprep.mubr.f32.mxu1 %v622_v2  ;;  %v2365_v63 = vpack.c.bf16 %v259_v56, %v257_v55  ;;  %v2481_v2 = vpack.c.bf16 %v375_v58, %v373_v57  ;;  %v2483_v11 = vpack.c.bf16 %v374_v3, %v372_v62  ;;  %v388_v56 = vld [vmem:[#allocation2 + $0x520] sm:$0xff]  ;;  %v390_v62 = vld [vmem:[#allocation2 + $0x530] sm:$0xff]  ;;  %v405_v44 = vld [vmem:[#allocation2 + $0x5a8] sm:$0xff] }
  0x5a   :  { %2466 = vmatprep.subr.bf16.mxu1 %v2465_v8  ;;  %v377_v8 = vld [vmem:[#allocation2 + $0x4c8] sm:$0xff]  ;;  %v2495_v55 = vpack.c.bf16 %v386_v34, %v384_v22  ;;  %v2381_v57 = vpack.c.bf16 %v275_v47, %v273_v35  ;;  %v272_v58 = vld [vmem:[#allocation2 + $0x180] sm:$0xff]  ;;  %v2499_v5 = vpack.c.bf16 %v390_v62, %v388_v56  ;;  %v402_v22 = vld [vmem:[#allocation2 + $0x590] sm:$0xff] }
  0x5b   :  { %2364 = vmatpush1.bf16.msra.mxu0 %v2363_v60  ;;  %v274_v60 = vld [vmem:[#allocation2 + $0x190] sm:$0xff]  ;;  %v2511_v35 = vpack.c.bf16 %v402_v22, %v400_v40  ;;  %v428_v40 = vld [vmem:[#allocation2 + $0x660] sm:$0xff]  ;;  %v439_v22 = vld [vmem:[#allocation2 + $0x6b8] sm:$0xff] }
  0x5c   :  { %2366 = vmatprep.subr.bf16.mxu0 %v2365_v63  ;;  %v277_v63 = vld [vmem:[#allocation2 + $0x1a8] sm:$0xff]  ;;  %v2383_v3 = vpack.c.bf16 %v274_v60, %v272_v58  ;;  %v406_v56 = vld [vmem:[#allocation2 + $0x5b0] sm:$0xff]  ;;  %v411_v60 = vld [vmem:[#allocation2 + $0x5d8] sm:$0xff] }
  0x5d   :  { %2468 = vmatpush1.bf16.msra.mxu1 %v2467_v31  ;;  %v2485_v31 = vpack.c.bf16 %v379_v9, %v377_v8  ;;  %v2385_v8 = vpack.c.bf16 %v279_v0, %v277_v63  ;;  %v276_v9 = vld [vmem:[#allocation2 + $0x1a0] sm:$0xff]  ;;  %v409_v58 = vld [vmem:[#allocation2 + $0x5c8] sm:$0xff] }
  0x5e   :  { %2470 = vmatprep.subr.bf16.mxu1 %v2469_v24  ;;  %v383_v24 = vld [vmem:[#allocation2 + $0x4f8] sm:$0xff]  ;;  %v2517_v63 = vpack.c.bf16 %v411_v60, %v409_v58  ;;  %v408_v0 = vld [vmem:[#allocation2 + $0x5c0] sm:$0xff] }
  0x5f   :  { %2368 = vmatpush1.bf16.msra.mxu0 %v2367_v10  ;;  %v278_v10 = vld [vmem:[#allocation2 + $0x1b0] sm:$0xff]  ;;  %v444_v60 = vld [vmem:[#allocation2 + $0x6e0] sm:$0xff] }
  0x60   :  { %2370 = vmatprep.subr.bf16.mxu0 %v2369_v14  ;;  %v281_v14 = vld [vmem:[#allocation2 + $0x1c8] sm:$0xff]  ;;  %v2387_v36 = vpack.c.bf16 %v278_v10, %v276_v9  ;;  %v419_v10 = vld [vmem:[#allocation2 + $0x618] sm:$0xff] }
  0x61   :  { %2472 = vmatpush1.bf16.msra.mxu1 %v2471_v37  ;;  %v2489_v37 = vpack.c.bf16 %v383_v24, %v381_v23  ;;  %v2389_v23 = vpack.c.bf16 %v283_v15, %v281_v14  ;;  %v280_v24 = vld [vmem:[#allocation2 + $0x1c0] sm:$0xff]  ;;  %v417_v9 = vld [vmem:[#allocation2 + $0x608] sm:$0xff]  ;;  %v418_v15 = vld [vmem:[#allocation2 + $0x610] sm:$0xff] }
  0x62   :  { %2474 = vmatprep.subr.bf16.mxu1 %v2473_v16  ;;  %v387_v16 = vld [vmem:[#allocation2 + $0x518] sm:$0xff]  ;;  %v2525_v12 = vpack.c.bf16 %v419_v10, %v417_v9  ;;  %v416_v14 = vld [vmem:[#allocation2 + $0x600] sm:$0xff]  ;;  %v454_v10 = vld [vmem:[#allocation2 + $0x730] sm:$0xff] }
  0x63   :  { %2372 = vmatpush1.bf16.msra.mxu0 %v2371_v27  ;;  %v282_v27 = vld [vmem:[#allocation2 + $0x1d0] sm:$0xff]  ;;  %v452_v9 = vld [vmem:[#allocation2 + $0x720] sm:$0xff] }
  0x64   :  { %2374 = vmatprep.subr.bf16.mxu0 %v2373_v30  ;;  %v285_v30 = vld [vmem:[#allocation2 + $0x1e8] sm:$0xff]  ;;  %v2391_v38 = vpack.c.bf16 %v282_v27, %v280_v24  ;;  %v427_v27 = vld [vmem:[#allocation2 + $0x658] sm:$0xff] }
  0x65   :  { %2476 = vmatpush1.bf16.msra.mxu1 %v2475_v26  ;;  %v2493_v26 = vpack.c.bf16 %v387_v16, %v385_v41  ;;  %v2393_v41 = vpack.c.bf16 %v287_v32, %v285_v30  ;;  %v284_v16 = vld [vmem:[#allocation2 + $0x1e0] sm:$0xff]  ;;  %v425_v24 = vld [vmem:[#allocation2 + $0x648] sm:$0xff]  ;;  %v426_v32 = vld [vmem:[#allocation2 + $0x650] sm:$0xff] }
  0x66   :  { %2478 = vmatprep.subr.bf16.mxu1 %v2477_v52  ;;  %v391_v52 = vld [vmem:[#allocation2 + $0x538] sm:$0xff]  ;;  %v2533_v29 = vpack.c.bf16 %v427_v27, %v425_v24  ;;  %v424_v30 = vld [vmem:[#allocation2 + $0x640] sm:$0xff]  ;;  %v462_v27 = vld [vmem:[#allocation2 + $0x770] sm:$0xff] }
  0x67   :  { %2376 = vmatpush1.bf16.msra.mxu0 %v2375_v17  ;;  %v286_v17 = vld [vmem:[#allocation2 + $0x1f0] sm:$0xff]  ;;  %v460_v24 = vld [vmem:[#allocation2 + $0x760] sm:$0xff] }
  0x68   :  { %2378 = vmatprep.subr.bf16.mxu0 %v2377_v42  ;;  %v917_v42 = vld [vmem:[%s3459_s7 + $0x8] sm:$0xff]  ;;  %v2395_v34 = vpack.c.bf16 %v286_v17, %v284_v16 }
  0x69   :  { %2480 = vmatpush1.bf16.msra.mxu1 %v2479_v61  ;;  %v2497_v61 = vpack.c.bf16 %v391_v52, %v389_v49  ;;  %v2589_v47 = vpack.c.bf16 %v919_v43, %v917_v42  ;;  %v916_v49 = vld [vmem:[%s3459_s7] sm:$0xff]  ;;  %v918_v52 = vld [vmem:[%s3459_s7 + $0x10] sm:$0xff]  ;;  %v433_v16 = vld [vmem:[#allocation2 + $0x688] sm:$0xff]  ;;  %v2543_v42 = vpack.c.bf16 %v434_v51, %v432_v50 }
  0x6a   :  { %2482 = vmatprep.subr.bf16.mxu1 %v2481_v2  ;;  %v395_v2 = vld [vmem:[#allocation2 + $0x558] sm:$0xff] }
  0x6b   :  { %2380 = vmatpush1.bf16.msra.mxu0 %v2379_v53 }
  0x6c   :  { %2382 = vmatprep.subr.bf16.mxu0 %v2381_v57  ;;  %v616_v57 = vcombine.low %v3051_v45, %v3054_v25 }
  0x6d   :  { %2484 = vmatpush1.bf16.msra.mxu1 %v2483_v11  ;;  %v2501_v11 = vpack.c.bf16 %v395_v2, %v393_v1  ;;  %v410_v1 = vld [vmem:[#allocation2 + $0x5d0] sm:$0xff]  ;;  %v413_v2 = vld [vmem:[#allocation2 + $0x5e8] sm:$0xff] }
  0x6e   :  { %2486 = vmatprep.subr.bf16.mxu1 %v2485_v31  ;;  %v399_v31 = vld [vmem:[#allocation2 + $0x578] sm:$0xff]  ;;  %v2519_v45 = vpack.c.bf16 %v410_v1, %v408_v0 }
  0x6f   :  { %2384 = vmatpush1.bf16.msra.mxu0 %v2383_v3  ;;  %v415_v3 = vld [vmem:[#allocation2 + $0x5f8] sm:$0xff] }
  0x70   :  { %2386 = vmatprep.subr.bf16.mxu0 %v2385_v8  ;;  %v2521_v25 = vpack.c.bf16 %v415_v3, %v413_v2  ;;  %v414_v8 = vld [vmem:[#allocation2 + $0x5f0] sm:$0xff]  ;;  %v448_v2 = vld [vmem:[#allocation2 + $0x700] sm:$0xff] }
  0x71   :  { %2488 = vmatpush1.bf16.msra.mxu1 %v2487_v28  ;;  %v2505_v28 = vpack.c.bf16 %v399_v31, %v397_v18  ;;  %v421_v18 = vld [vmem:[#allocation2 + $0x628] sm:$0xff]  ;;  %v423_v31 = vld [vmem:[#allocation2 + $0x638] sm:$0xff]  ;;  %v450_v3 = vld [vmem:[#allocation2 + $0x710] sm:$0xff] }
  0x72   :  { %2490 = vmatprep.subr.bf16.mxu1 %v2489_v37  ;;  %v403_v37 = vld [vmem:[#allocation2 + $0x598] sm:$0xff] }
  0x73   :  { %2388 = vmatpush1.bf16.msra.mxu0 %v2387_v36  ;;  %v2527_v36 = vpack.c.bf16 %v418_v15, %v416_v14  ;;  %v2563_v14 = vpack.c.bf16 %v454_v10, %v452_v9  ;;  %v1268_v9 = vld [vmem:[%s3460_s8 + $0x90] sm:$0xff]  ;;  %v1269_v10 = vld [vmem:[%s3460_s8 + $0x98] sm:$0xff] }
  0x74   :  { %2390 = vmatprep.subr.bf16.mxu0 %v2389_v23  ;;  %v422_v23 = vld [vmem:[#allocation2 + $0x630] sm:$0xff] }
  0x75   :  { %2492 = vmatpush1.bf16.msra.mxu1 %v2491_v21  ;;  %v2509_v21 = vpack.c.bf16 %v403_v37, %v401_v33  ;;  %v429_v33 = vld [vmem:[#allocation2 + $0x668] sm:$0xff]  ;;  %v431_v37 = vld [vmem:[#allocation2 + $0x678] sm:$0xff] }
  0x76   :  { %2494 = vmatprep.subr.bf16.mxu1 %v2493_v26  ;;  %v407_v26 = vld [vmem:[#allocation2 + $0x5b8] sm:$0xff] }
  0x77   :  { %2392 = vmatpush1.bf16.msra.mxu0 %v2391_v38  ;;  %v2513_v53 = vpack.c.bf16 %v407_v26, %v405_v44  ;;  %v2535_v38 = vpack.c.bf16 %v426_v32, %v424_v30  ;;  %v436_v44 = vld [vmem:[#allocation2 + $0x6a0] sm:$0xff]  ;;  %v438_v26 = vld [vmem:[#allocation2 + $0x6b0] sm:$0xff]  ;;  %v2571_v30 = vpack.c.bf16 %v462_v27, %v460_v24  ;;  %v1273_v27 = vld [vmem:[%s3460_s8 + $0xb8] sm:$0xff] }
  0x78   :  { %2394 = vmatprep.subr.bf16.mxu0 %v2393_v41  ;;  %v430_v41 = vld [vmem:[#allocation2 + $0x670] sm:$0xff] }
  0x79   :  { %2496 = vmatpush1.bf16.msra.mxu1 %v2495_v55  ;;  %v404_v55 = vld [vmem:[#allocation2 + $0x5a0] sm:$0xff]  ;;  %v2539_v17 = vpack.c.bf16 %v430_v41, %v428_v40  ;;  %v1272_v24 = vld [vmem:[%s3460_s8 + $0xb0] sm:$0xff] }
  0x7a   :  { %2498 = vmatprep.subr.bf16.mxu1 %v2497_v61  ;;  %v2591_v61 = vpack.c.bf16 %v918_v52, %v916_v49  ;;  %v2515_v62 = vpack.c.bf16 %v406_v56, %v404_v55  ;;  %v440_v52 = vld [vmem:[#allocation2 + $0x6c0] sm:$0xff]  ;;  %v445_v55 = vld [vmem:[#allocation2 + $0x6e8] sm:$0xff]  ;;  %v447_v56 = vld [vmem:[#allocation2 + $0x6f8] sm:$0xff] }
  0x7b   :  { %2396 = vmatpush1.bf16.msra.mxu0 %v2395_v34  ;;  %v441_v34 = vld [vmem:[#allocation2 + $0x6c8] sm:$0xff]  ;;  %v2553_v58 = vpack.c.bf16 %v447_v56, %v445_v55 }
  0x7c   :  { %2590 = vmatprep.subr.bf16.mxu0 %v2589_v47  ;;  %v2547_v47 = vpack.c.bf16 %v438_v26, %v436_v44 }
  0x7d   :  { %2500 = vmatpush1.bf16.msra.mxu1 %v2499_v5  ;;  %v2841_v5 = vmov 0.0  }
  0x7e   :  { %2502 = vmatprep.subr.bf16.mxu1 %v2501_v11  ;;  %697 = vmatmul.mubr.f32.vlgmr.msra.gmra.mrb[8].mxu0 %v616_v57  ;;  %v2523_v11 = vpack.c.bf16 %v414_v8, %v412_v6  ;;  %v2559_v6 = vpack.c.bf16 %v450_v3, %v448_v2  ;;  %v1266_v3 = vld [vmem:[%s3460_s8 + $0x80] sm:$0xff] }
  0x7f   :  { %2592 = vmatpush1.bf16.msra.mxu0 %v2591_v61  ;;  %1009 = vmatprep.mubr.f32.mxu0 %v2841_v5  ;;  %v446_v61 = vld [vmem:[#allocation2 + $0x6f0] sm:$0xff] }
  0x80   :  { %v2555_v0 = vpack.c.bf16 %v446_v61, %v444_v60 }
  0x81   :  { %2504 = vmatpush1.bf16.msra.mxu1 %v2503_v19  ;;  %v2529_v19 = vpack.c.bf16 %v423_v31, %v421_v18  ;;  %v456_v18 = vld [vmem:[#allocation2 + $0x740] sm:$0xff]  ;;  %v458_v31 = vld [vmem:[#allocation2 + $0x750] sm:$0xff] }
  0x82   :  { %2506 = vmatprep.subr.bf16.mxu1 %v2505_v28  ;;  %v2531_v28 = vpack.c.bf16 %v422_v23, %v420_v20  ;;  %v2567_v20 = vpack.c.bf16 %v458_v31, %v456_v18  ;;  %v1270_v18 = vld [vmem:[%s3460_s8 + $0xa0] sm:$0xff]  ;;  %v1271_v31 = vld [vmem:[%s3460_s8 + $0xa8] sm:$0xff] }
  0x85   :  { %2508 = vmatpush1.bf16.msra.mxu1 %v2507_v39  ;;  %v2537_v39 = vpack.c.bf16 %v431_v37, %v429_v33  ;;  %v464_v33 = vld [vmem:[#allocation2 + $0x780] sm:$0xff]  ;;  %v466_v37 = vld [vmem:[#allocation2 + $0x790] sm:$0xff] }
  0x86   :  { %2510 = vmatprep.subr.bf16.mxu1 %v2509_v21  ;;  %v2575_v40 = vpack.c.bf16 %v466_v37, %v464_v33  ;;  %v1274_v37 = vld [vmem:[%s3460_s8 + $0xc0] sm:$0xff] }
  0x89   :  { %2512 = vmatpush1.bf16.msra.mxu1 %v2511_v35  ;;  %v443_v35 = vld [vmem:[#allocation2 + $0x6d8] sm:$0xff] }
  0x8a   :  { %2514 = vmatprep.subr.bf16.mxu1 %v2513_v53  ;;  %v2549_v49 = vpack.c.bf16 %v443_v35, %v441_v34  ;;  %v442_v53 = vld [vmem:[#allocation2 + $0x6d0] sm:$0xff]  ;;  %v476_v34 = vld [vmem:[#allocation2 + $0x7e0] sm:$0xff] }
  0x8b   :  { %v2551_v57 = vpack.c.bf16 %v442_v53, %v440_v52  ;;  %v478_v35 = vld [vmem:[#allocation2 + $0x7f0] sm:$0xff] }
  0x8d   :  { %2516 = vmatpush1.bf16.msra.mxu1 %v2515_v62  ;;  %v449_v62 = vld [vmem:[#allocation2 + $0x708] sm:$0xff] }
  0x8e   :  { %2518 = vmatprep.subr.bf16.mxu1 %v2517_v63  ;;  %v451_v63 = vld [vmem:[#allocation2 + $0x718] sm:$0xff] }
  0x8f   :  { %v2557_v1 = vpack.c.bf16 %v451_v63, %v449_v62 }
  0x91   :  { %2520 = vmatpush1.bf16.msra.mxu1 %v2519_v45  ;;  %v453_v45 = vld [vmem:[#allocation2 + $0x728] sm:$0xff] }
  0x92   :  { %2522 = vmatprep.subr.bf16.mxu1 %v2521_v25  ;;  %v455_v25 = vld [vmem:[#allocation2 + $0x738] sm:$0xff] }
  0x93   :  { %v2561_v8 = vpack.c.bf16 %v455_v25, %v453_v45  ;;  %v1267_v45 = vld [vmem:[%s3460_s8 + $0x88] sm:$0xff]  ;;  %v1250_v25 = vld [vmem:[%s3460_s8] sm:$0xff] }
  0x95   :  { %2524 = vmatpush1.bf16.msra.mxu1 %v2523_v11  ;;  %v457_v11 = vld [vmem:[#allocation2 + $0x748] sm:$0xff] }
  0x96   :  { %2526 = vmatprep.subr.bf16.mxu1 %v2525_v12  ;;  %v459_v12 = vld [vmem:[#allocation2 + $0x758] sm:$0xff] }
  0x97   :  { %v2565_v15 = vpack.c.bf16 %v459_v12, %v457_v11  ;;  %v2597_v12 = vpack.c.bf16 %v1269_v10, %v1268_v9 }
  0x98   :  { %839 = vmatmul.mubr.f32.vlgmr.msra.gmra.mrb[0].mxu1 %v618_v54  ;;  %v435_v54 = vld [vmem:[#allocation2 + $0x698] sm:$0xff] }
  0x99   :  { %2528 = vmatpush1.bf16.msra.mxu1 %v2527_v36  ;;  %909 = vmatprep.mubr.f32.mxu1 %v623_v7  ;;  %v2541_v21 = vpack.c.bf16 %v435_v54, %v433_v16  ;;  %v437_v7 = vld [vmem:[#allocation2 + $0x6a8] sm:$0xff]  ;;  %v468_v16 = vld [vmem:[#allocation2 + $0x7a0] sm:$0xff]  ;;  %v470_v54 = vld [vmem:[#allocation2 + $0x7b0] sm:$0xff] }
  0x9a   :  { %2530 = vmatprep.subr.bf16.mxu1 %v2529_v19  ;;  %v2545_v43 = vpack.c.bf16 %v439_v22, %v437_v7  ;;  %v461_v36 = vld [vmem:[#allocation2 + $0x768] sm:$0xff]  ;;  %v463_v19 = vld [vmem:[#allocation2 + $0x778] sm:$0xff]  ;;  %v2579_v50 = vpack.c.bf16 %v470_v54, %v468_v16  ;;  %v472_v7 = vld [vmem:[#allocation2 + $0x7c0] sm:$0xff] }
  0x9b   :  { %v2569_v23 = vpack.c.bf16 %v463_v19, %v461_v36  ;;  %v474_v22 = vld [vmem:[#allocation2 + $0x7d0] sm:$0xff]  ;;  %v2601_v19 = vpack.c.bf16 %v1271_v31, %v1270_v18 }
  0x9c   :  { %v2583_v44 = vpack.c.bf16 %v474_v22, %v472_v7  ;;  %v1276_v54 = vld [vmem:[%s3460_s8 + $0xd0] sm:$0xff]  ;;  %v1278_v22 = vld [vmem:[%s3460_s8 + $0xe0] sm:$0xff] }
  0x9d   :  { %2532 = vmatpush1.bf16.msra.mxu1 %v2531_v28  ;;  %v465_v28 = vld [vmem:[#allocation2 + $0x788] sm:$0xff] }
  0x9e   :  { %2534 = vmatprep.subr.bf16.mxu1 %v2533_v29  ;;  %v467_v29 = vld [vmem:[#allocation2 + $0x798] sm:$0xff] }
  0x9f   :  { %v2573_v32 = vpack.c.bf16 %v467_v29, %v465_v28  ;;  %v2605_v29 = vpack.c.bf16 %v1273_v27, %v1272_v24 }
  0xa1   :  { %2536 = vmatpush1.bf16.msra.mxu1 %v2535_v38  ;;  %v469_v38 = vld [vmem:[#allocation2 + $0x7a8] sm:$0xff] }
  0xa2   :  { %2538 = vmatprep.subr.bf16.mxu1 %v2537_v39  ;;  %v471_v39 = vld [vmem:[#allocation2 + $0x7b8] sm:$0xff] }
  0xa3   :  { %v2577_v41 = vpack.c.bf16 %v471_v39, %v469_v38  ;;  %v1275_v38 = vld [vmem:[%s3460_s8 + $0xc8] sm:$0xff] }
  0xa4   :  { %v2609_v39 = vpack.c.bf16 %v1275_v38, %v1274_v37 }
  0xa5   :  { %2540 = vmatpush1.bf16.msra.mxu1 %v2539_v17  ;;  %v473_v17 = vld [vmem:[#allocation2 + $0x7c8] sm:$0xff] }
  0xa6   :  { %2542 = vmatprep.subr.bf16.mxu1 %v2541_v21  ;;  %v475_v21 = vld [vmem:[#allocation2 + $0x7d8] sm:$0xff] }
  0xa7   :  { %v2581_v51 = vpack.c.bf16 %v475_v21, %v473_v17  ;;  %v1277_v17 = vld [vmem:[%s3460_s8 + $0xd8] sm:$0xff] }
  0xa8   :  { %v2613_v21 = vpack.c.bf16 %v1277_v17, %v1276_v54 }
  0xa9   :  { %2544 = vmatpush1.bf16.msra.mxu1 %v2543_v42  ;;  %v477_v42 = vld [vmem:[#allocation2 + $0x7e8] sm:$0xff] }
  0xaa   :  { %2546 = vmatprep.subr.bf16.mxu1 %v2545_v43  ;;  %v479_v43 = vld [vmem:[#allocation2 + $0x7f8] sm:$0xff] }
  0xab   :  { %v2585_v26 = vpack.c.bf16 %v479_v43, %v477_v42  ;;  %v1279_v42 = vld [vmem:[%s3460_s8 + $0xe8] sm:$0xff] }
  0xac   :  { %v2617_v43 = vpack.c.bf16 %v1279_v42, %v1278_v22 }
  0xad   :  { %2548 = vmatpush1.bf16.msra.mxu1 %v2547_v47  ;;  %v2587_v47 = vpack.c.bf16 %v478_v35, %v476_v34  ;;  %v1280_v35 = vld [vmem:[%s3460_s8 + $0xf0] sm:$0xff] }
  0xae   :  { %2550 = vmatprep.subr.bf16.mxu1 %v2549_v49  ;;  %v2132_v49 = vld [vmem:[%s3457_s5] ss:$0 sm:$0xff] }
  0xb1   :  { %2552 = vmatpush1.bf16.msra.mxu1 %v2551_v57 }
  0xb2   :  { %2554 = vmatprep.subr.bf16.mxu1 %v2553_v58 }
  0xb5   :  { %2556 = vmatpush1.bf16.msra.mxu1 %v2555_v0 }
  0xb6   :  { %2558 = vmatprep.subr.bf16.mxu1 %v2557_v1 }
  0xb9   :  { %2560 = vmatpush1.bf16.msra.mxu1 %v2559_v6  ;;  %v2593_v6 = vpack.c.bf16 %v1267_v45, %v1266_v3 }
  0xba   :  { %2562 = vmatprep.subr.bf16.mxu1 %v2561_v8  ;;  %v1251_v8 = vld [vmem:[%s3460_s8 + $0x8] sm:$0xff] }
  0xbb   :  { %v2595_v11 = vpack.c.bf16 %v1251_v8, %v1250_v25  ;;  %2594 = vmatprep.subr.bf16.mxu0 %v2593_v6 }
  0xbd   :  { %2564 = vmatpush1.bf16.msra.mxu1 %v2563_v14  ;;  %v1252_v14 = vld [vmem:[%s3460_s8 + $0x10] sm:$0xff] }
  0xbe   :  { %2566 = vmatprep.subr.bf16.mxu1 %v2565_v15  ;;  %v1253_v15 = vld [vmem:[%s3460_s8 + $0x18] sm:$0xff] }
  0xbf   :  { %v2599_v36 = vpack.c.bf16 %v1253_v15, %v1252_v14 }
  0xc1   :  { %2568 = vmatpush1.bf16.msra.mxu1 %v2567_v20  ;;  %v1254_v20 = vld [vmem:[%s3460_s8 + $0x20] sm:$0xff] }
  0xc2   :  { %2570 = vmatprep.subr.bf16.mxu1 %v2569_v23  ;;  %v1255_v23 = vld [vmem:[%s3460_s8 + $0x28] sm:$0xff] }
  0xc3   :  { %v2603_v28 = vpack.c.bf16 %v1255_v23, %v1254_v20  ;;  %v1222_v23 = vld [vmem:[%s3458_s6] sm:$0x3] }
  0xc5   :  { %2572 = vmatpush1.bf16.msra.mxu1 %v2571_v30  ;;  %v1256_v30 = vld [vmem:[%s3460_s8 + $0x30] sm:$0xff] }
  0xc6   :  { %2574 = vmatprep.subr.bf16.mxu1 %v2573_v32  ;;  %v1257_v32 = vld [vmem:[%s3460_s8 + $0x38] sm:$0xff] }
  0xc7   :  { %v2607_v33 = vpack.c.bf16 %v1257_v32, %v1256_v30 }
  0xc9   :  { %2576 = vmatpush1.bf16.msra.mxu1 %v2575_v40  ;;  %v1258_v40 = vld [vmem:[%s3460_s8 + $0x40] sm:$0xff] }
  0xca   :  { %2578 = vmatprep.subr.bf16.mxu1 %v2577_v41  ;;  %v1259_v41 = vld [vmem:[%s3460_s8 + $0x48] sm:$0xff] }
  0xcb   :  { %v2611_v16 = vpack.c.bf16 %v1259_v41, %v1258_v40 }
  0xcd   :  { %2580 = vmatpush1.bf16.msra.mxu1 %v2579_v50  ;;  %v1260_v50 = vld [vmem:[%s3460_s8 + $0x50] sm:$0xff] }
  0xce   :  { %2582 = vmatprep.subr.bf16.mxu1 %v2581_v51  ;;  %v1261_v51 = vld [vmem:[%s3460_s8 + $0x58] sm:$0xff] }
  0xcf   :  { %v2615_v7 = vpack.c.bf16 %v1261_v51, %v1260_v50 }
  0xd1   :  { %2584 = vmatpush1.bf16.msra.mxu1 %v2583_v44  ;;  %v1262_v44 = vld [vmem:[%s3460_s8 + $0x60] sm:$0xff] }
  0xd2   :  { %2586 = vmatprep.subr.bf16.mxu1 %v2585_v26  ;;  %v1263_v26 = vld [vmem:[%s3460_s8 + $0x68] sm:$0xff] }
  0xd3   :  { %v2619_v34 = vpack.c.bf16 %v1263_v26, %v1262_v44 }
  0xd5   :  { %2588 = vmatpush1.bf16.msra.mxu1 %v2587_v47  ;;  %v1281_v47 = vld [vmem:[%s3460_s8 + $0xf8] sm:$0xff] }
  0xd8   :  { %910 = vmatmul.mubr.f32.vlgmr.msra.gmra.mrb[0].mxu1 %v619_v13 }
  0xf2   :  { %v2259_v52 = vpop.f32.mrb[0].mxu0 }
  0xf3   :  { %v177_v53 = vpop.f32.mrb[1].mxu0  ;;  %v183_v58 = vadd.f32 %v2259_v52, %v2132_v49  ;;  %v1264_v52 = vld [vmem:[%s3460_s8 + $0x70] sm:$0xff] }
  0xf4   :  { %v178_v55 = vadd.f32 %v2132_v49, %v177_v53  ;;  %v1265_v53 = vld [vmem:[%s3460_s8 + $0x78] sm:$0xff] }
  0xf6   :  { %2141 = vmatmul.mubr.msk.f32.vlgmr.msra.gmra.mrb[10].mxu0 %vm920_vm1, %v178_v55  ;;  %v2262_v56 = vpop.f32.mrb[2].mxu0  ;;  %v2623_v55 = vpack.c.bf16 %v1265_v53, %v1264_v52 }
  0xf7   :  { %1015 = vmatprep.mubr.f32.mxu0 %v2841_v5  ;;  %v187_v57 = vpop.f32.mrb[3].mxu0  ;;  %v193_v62 = vadd.f32 %v2262_v56, %v2132_v49  ;;  %2596 = vmatpush3.bf16.msra.mxu0 %v2595_v11 }
  0xf8   :  { %v188_v60 = vadd.f32 %v2132_v49, %v187_v57  ;;  %2598 = vmatprep.subr.bf16.mxu0 %v2597_v12 }
  0xfa   :  { %2142 = vmatmul.mubr.msk.f32.gmra.mrb[12].mxu0 %vm920_vm1, %v183_v58  ;;  %v2265_v46 = vpop.f32.mrb[4].mxu0 }
  0xfb   :  { %1021 = vmatprep.mubr.f32.mxu0 %v2841_v5  ;;  %v197_v48 = vpop.f32.mrb[5].mxu0  ;;  %v203_v0 = vadd.f32 %v2265_v46, %v2132_v49  ;;  %2600 = vmatpush3.bf16.msra.mxu0 %v2599_v36 }
  0xfc   :  { %v198_v63 = vadd.f32 %v2132_v49, %v197_v48  ;;  %2602 = vmatprep.subr.bf16.mxu0 %v2601_v19 }
  0xfe   :  { %2143 = vmatmul.mubr.msk.f32.gmra.mrb[14].mxu0 %vm920_vm1, %v188_v60  ;;  %v2268_v13 = vpop.f32.mrb[6].mxu0 }
  0xff   :  { %1027 = vmatprep.mubr.f32.mxu0 %v2841_v5  ;;  %v207_v61 = vpop.f32.mrb[7].mxu0  ;;  %v213_v2 = vadd.f32 %v2268_v13, %v2132_v49  ;;  %2604 = vmatpush3.bf16.msra.mxu0 %v2603_v28 }
 0x100   :  { %v208_v1 = vadd.f32 %v2132_v49, %v207_v61  ;;  %2606 = vmatprep.subr.bf16.mxu0 %v2605_v29  ;;  %v2621_v49 = vpack.c.bf16 %v1281_v47, %v1280_v35 }
 0x102   :  { %2144 = vmatmul.mubr.msk.f32.gmra.mrb[16].mxu0 %vm920_vm1, %v193_v62 }
 0x103   :  { %1033 = vmatprep.mubr.f32.mxu0 %v2841_v5  ;;  %2608 = vmatpush3.bf16.msra.mxu0 %v2607_v33 }
 0x104   :  { %2610 = vmatprep.subr.bf16.mxu0 %v2609_v39 }
 0x106   :  { %2145 = vmatmul.mubr.msk.f32.gmra.mrb[18].mxu0 %vm920_vm1, %v198_v63 }
 0x107   :  { %1039 = vmatprep.mubr.f32.mxu0 %v2841_v5  ;;  %2612 = vmatpush3.bf16.msra.mxu0 %v2611_v16 }
 0x108   :  { %2614 = vmatprep.subr.bf16.mxu0 %v2613_v21 }
 0x10a   :  { %2146 = vmatmul.mubr.msk.f32.gmra.mrb[20].mxu0 %vm920_vm1, %v203_v0 }
 0x10b   :  { %1045 = vmatprep.mubr.f32.mxu0 %v2841_v5  ;;  %2616 = vmatpush3.bf16.msra.mxu0 %v2615_v7 }
 0x10c   :  { %2618 = vmatprep.subr.bf16.mxu0 %v2617_v43 }
 0x10e   :  { %2147 = vmatmul.mubr.msk.f32.gmra.mrb[22].mxu0 %vm920_vm1, %v208_v1  ;;  %v3213_v1 = vsub.s32 0, %v2964_v59 }
 0x10f   :  { %1051 = vmatprep.mubr.f32.mxu0 %v2841_v5  ;;  %2620 = vmatpush3.bf16.msra.mxu0 %v2619_v34 }
 0x110   :  { %2622 = vmatprep.subr.bf16.mxu0 %v2621_v49  ;;  %v3236_v41 = vrot.slane %v1222_v23, %v3213_v1 }
 0x112   :  { %2148 = vmatmul.mubr.msk.f32.gmra.mrb[24].mxu0 %vm920_vm1, %v213_v2  ;;  %v3216_v2 = vsub.s32 1, %v2964_v59 }
 0x113   :  { %2624 = vmatpush3.bf16.msra.mxu0 %v2623_v55 }
 0x114   :  { %v3230_v32 = vrot.slane %v1222_v23, %v3216_v2 }
 0x151   :  { %v698_v56 = vpop.f32.mrb[8].mxu0 }
 0x152   :  { %v700_v57 = vpop.f32.mrb[9].mxu0 }
 0x1ab   :  { %v911_v58 = vpop.f32.mrb[0].mxu1 }
 0x1ac   :  { %v2649_v60 = vadd.f32 %v911_v58, %v698_v56  ;;  %v913_v46 = vpop.f32.mrb[1].mxu1 }
 0x1ad   :  { %v2650_v48 = vadd.f32 %v913_v46, %v700_v57 }
 0x1af   :  { %v1060_v13 = vcombine.low %v2649_v60, %v2650_v48  ;;  %v1061_v61 = vcombine.high %v2649_v60, %v2650_v48 }
 0x1b1   :  { %v1068_v62 = vrot.slane %v1060_v13, %v2968_v4  ;;  %v1075_v36 = vrot.slane %v1061_v61, %v2968_v4 }
 0x1b3   :  { %v1076_v63 = vcombine.high %v1068_v62, %v1068_v62  ;;  %v1084_v0 = vrot.slane %v1068_v62, %v2968_v4  ;;  %v1077_v33 = vcombine.high %v1075_v36, %v1075_v36  ;;  %v1091_v37 = vrot.slane %v1075_v36, %v2968_v4 }
 0x1b5   :  { %v1113_v3 = vrot.slane %v1084_v0, %v3213_v1  ;;  %v1098_v45 = vrot.slane %v1076_v63, %v2968_v4  ;;  %v1117_v6 = vrot.slane %v1084_v0, %v3216_v2  ;;  %v1106_v12 = vcombine.high %v1084_v0, %v1084_v0 }
 0x1b6   :  { %v1145_v51 = vrot.slane %v1091_v37, %v3213_v1  ;;  %v1105_v22 = vrot.slane %v1077_v33, %v2968_v4  ;;  %v1149_v43 = vrot.slane %v1091_v37, %v3216_v2  ;;  %v1107_v55 = vcombine.high %v1091_v37, %v1091_v37 }
 0x1b7   :  { %v1121_v11 = vrot.slane %v1098_v45, %v3213_v1  ;;  %v1125_v15 = vrot.slane %v1098_v45, %v3216_v2  ;;  %v1129_v19 = vrot.slane %v1106_v12, %v3213_v1  ;;  %v1108_v20 = vcombine.high %v1098_v45, %v1098_v45 }
 0x1b8   :  { %v1133_v27 = vrot.slane %v1106_v12, %v3216_v2  ;;  %v1153_v52 = vrot.slane %v1105_v22, %v3213_v1  ;;  %v1157_v56 = vrot.slane %v1105_v22, %v3216_v2  ;;  %v1161_v61 = vrot.slane %v1107_v55, %v3213_v1 }
 0x1b9   :  { %v1137_v38 = vrot.slane %v1108_v20, %v3213_v1  ;;  %v1141_v40 = vrot.slane %v1108_v20, %v3216_v2  ;;  %v1109_v63 = vcombine.high %v1105_v22, %v1105_v22 }
 0x1c9   :  { %v1011_v25 = vpop.f32.mrb[10].mxu0 }
 0x1ca   :  { %v1190_v8 = vadd.f32 %v1113_v3, %v1011_v25  ;;  %v1013_v9 = vpop.f32.mrb[11].mxu0  ;;  %v1165_v3 = vrot.slane %v1107_v55, %v3216_v2 }
 0x1cb   :  { %v1191_v10 = vadd.f32 %v1117_v6, %v1013_v9 }
 0x1cc   :  { %2679 = vtanh.f32 %v1190_v8 }
 0x1cd   :  { %2681 = vtanh.f32 %v1191_v10  ;;  %v1017_v14 = vpop.f32.mrb[12].mxu0 }
 0x1ce   :  { %v1192_v59 = vadd.f32 %v1121_v11, %v1017_v14  ;;  %v1019_v18 = vpop.f32.mrb[13].mxu0  ;;  %v1169_v11 = vrot.slane %v1109_v63, %v3213_v1 }
 0x1cf   :  { %v1193_v31 = vadd.f32 %v1125_v15, %v1019_v18  ;;  %v1173_v15 = vrot.slane %v1109_v63, %v3216_v2 }
 0x1d0   :  { %2683 = vtanh.f32 %v1192_v59 }
 0x1d1   :  { %2685 = vtanh.f32 %v1193_v31  ;;  %v1023_v24 = vpop.f32.mrb[14].mxu0 }
 0x1d2   :  { %v1194_v28 = vadd.f32 %v1129_v19, %v1023_v24  ;;  %v1025_v29 = vpop.f32.mrb[15].mxu0 }
 0x1d3   :  { %v1195_v30 = vadd.f32 %v1133_v27, %v1025_v29 }
 0x1d4   :  { %2687 = vtanh.f32 %v1194_v28 }
 0x1d5   :  { %2689 = vtanh.f32 %v1195_v30  ;;  %v1029_v39 = vpop.f32.mrb[16].mxu0 }
 0x1d6   :  { %v2680_v16 = vpop.eup %2679  ;;  %v1196_v54 = vadd.f32 %v1137_v38, %v1029_v39  ;;  %v1031_v17 = vpop.f32.mrb[17].mxu0 }
 0x1d7   :  { %v2682_v21 = vpop.eup %2681  ;;  %v1197_v50 = vadd.f32 %v1141_v40, %v1031_v17  ;;  %v1234_v44 = vmul.f32 %v2680_v16, %v3236_v41 }
 0x1d8   :  { %2691 = vtanh.f32 %v1196_v54  ;;  %v1235_v7 = vmul.f32 %v2682_v21, %v3230_v32 }
 0x1d9   :  { %2693 = vtanh.f32 %v1197_v50  ;;  %v1035_v42 = vpop.f32.mrb[18].mxu0 }
 0x1da   :  { %v2684_v26 = vpop.eup %2683  ;;  %v1198_v34 = vadd.f32 %v1145_v51, %v1035_v42  ;;  %v1037_v35 = vpop.f32.mrb[19].mxu0  ;;  %1346 = vmatprep.mubr.f32.mxu0 %v1235_v7 }
 0x1db   :  { %v2686_v47 = vpop.eup %2685  ;;  %v1199_v49 = vadd.f32 %v1149_v43, %v1037_v35  ;;  %1347 = vmatmul.mubr.f32.vlgmr.msra.gmra.mrb[26].mxu0 %v1234_v44  ;;  %v1236_v57 = vmul.f32 %v2684_v26, %v3236_v41 }
 0x1dc   :  { %2695 = vtanh.f32 %v1198_v34  ;;  %v1237_v53 = vmul.f32 %v2686_v47, %v3230_v32 }
 0x1dd   :  { %2697 = vtanh.f32 %v1199_v49  ;;  %v1041_v4 = vpop.f32.mrb[20].mxu0 }
 0x1de   :  { %v2688_v58 = vpop.eup %2687  ;;  %v1200_v60 = vadd.f32 %v1153_v52, %v1041_v4  ;;  %v1043_v46 = vpop.f32.mrb[21].mxu0  ;;  %1351 = vmatprep.mubr.f32.mxu0 %v1237_v53 }
 0x1df   :  { %v2690_v48 = vpop.eup %2689  ;;  %v1201_v13 = vadd.f32 %v1157_v56, %v1043_v46  ;;  %1352 = vmatmul.mubr.f32.gmra.mrb[28].mxu0 %v1236_v57  ;;  %v1238_v45 = vmul.f32 %v2688_v58, %v3236_v41 }
 0x1e0   :  { %2699 = vtanh.f32 %v1200_v60  ;;  %v1239_v62 = vmul.f32 %v2690_v48, %v3230_v32 }
 0x1e1   :  { %2701 = vtanh.f32 %v1201_v13  ;;  %v1047_v0 = vpop.f32.mrb[22].mxu0 }
 0x1e2   :  { %v2692_v25 = vpop.eup %2691  ;;  %v1202_v6 = vadd.f32 %v1161_v61, %v1047_v0  ;;  %v1049_v8 = vpop.f32.mrb[23].mxu0  ;;  %1356 = vmatprep.mubr.f32.mxu0 %v1239_v62 }
 0x1e3   :  { %v2694_v9 = vpop.eup %2693  ;;  %v1203_v10 = vadd.f32 %v1165_v3, %v1049_v8  ;;  %1357 = vmatmul.mubr.f32.gmra.mrb[30].mxu0 %v1238_v45  ;;  %v1240_v59 = vmul.f32 %v2692_v25, %v3236_v41  ;;  %v59_v3 = vld [vmem:[%s3453_s1] sm:$0xff]  ;;  %v60_v45 = vld [vmem:[%s3453_s1 + $0x8] sm:$0xff]  ;;  %v2842_v25 = vmov 0.0|0.0  }
 0x1e4   :  { %2703 = vtanh.f32 %v1202_v6  ;;  %v1241_v12 = vmul.f32 %v2694_v9, %v3230_v32  ;;  %2625 = vmatprep.subr.bf16.mxu0 %v2842_v25  ;;  %v2626_v6 = vpack.c.bf16 %v60_v45, %v59_v3 }
 0x1e5   :  { %2705 = vtanh.f32 %v1203_v10  ;;  %v1053_v14 = vpop.f32.mrb[24].mxu0 }
 0x1e6   :  { %v2696_v18 = vpop.eup %2695  ;;  %v1204_v31 = vadd.f32 %v1169_v11, %v1053_v14  ;;  %v1055_v36 = vpop.f32.mrb[25].mxu0  ;;  %1361 = vmatprep.mubr.f32.mxu0 %v1241_v12  ;;  %2627 = vmatpush3.bf16.msra.mxu0 %v2626_v6  ;;  %v67_v6 = vld [vmem:[%s3453_s1 + $0x40] sm:$0xff] }
 0x1e7   :  { %v2698_v19 = vpop.eup %2697  ;;  %v1205_v20 = vadd.f32 %v1173_v15, %v1055_v36  ;;  %1362 = vmatmul.mubr.f32.gmra.mrb[32].mxu0 %v1240_v59  ;;  %v1242_v1 = vmul.f32 %v2696_v18, %v3236_v41  ;;  %2628 = vmatprep.subr.bf16.mxu0 %v2842_v25 }
 0x1e8   :  { %2707 = vtanh.f32 %v1204_v31  ;;  %v1243_v23 = vmul.f32 %v2698_v19, %v3230_v32 }
 0x1e9   :  { %2709 = vtanh.f32 %v1205_v20 }
 0x1ea   :  { %v2700_v24 = vpop.eup %2699  ;;  %1366 = vmatprep.mubr.f32.mxu0 %v1243_v23 }
 0x1eb   :  { %v2702_v27 = vpop.eup %2701  ;;  %1367 = vmatmul.mubr.f32.gmra.mrb[34].mxu0 %v1242_v1  ;;  %v1244_v28 = vmul.f32 %v2700_v24, %v3236_v41 }
 0x1ec   :  { %v1245_v2 = vmul.f32 %v2702_v27, %v3230_v32 }
 0x1ee   :  { %v2704_v29 = vpop.eup %2703  ;;  %1371 = vmatprep.mubr.f32.mxu0 %v1245_v2 }
 0x1ef   :  { %v2706_v30 = vpop.eup %2705  ;;  %1372 = vmatmul.mubr.f32.gmra.mrb[36].mxu0 %v1244_v28  ;;  %v1246_v37 = vmul.f32 %v2704_v29, %v3236_v41 }
 0x1f0   :  { %v1247_v33 = vmul.f32 %v2706_v30, %v3230_v32 }
 0x1f2   :  { %v2708_v38 = vpop.eup %2707  ;;  %1376 = vmatprep.mubr.f32.mxu0 %v1247_v33 }
 0x1f3   :  { %v2710_v39 = vpop.eup %2709  ;;  %1377 = vmatmul.mubr.f32.gmra.mrb[38].mxu0 %v1246_v37  ;;  %v1248_v16 = vmul.f32 %v2708_v38, %v3236_v41 }
 0x1f4   :  { %v1249_v40 = vmul.f32 %v2710_v39, %v3230_v32 }
 0x1f6   :  { %1381 = vmatprep.mubr.f32.mxu0 %v1249_v40 }
 0x1f7   :  { %1382 = vmatmul.mubr.f32.gmra.mrb[40].mxu0 %v1248_v16 }
 0x1f8   :  { %2273 = vmatprep.mubr.msk.f32.mxu0 %vm2843_vm2, %v2841_v5 }
 0x2ae   :  { %v2201_v54 = vpop.f32.mrb[26].mxu0 }
 0x2af   :  { %v2202_v17 = vpop.f32.mrb[27].mxu0 }
 0x2b0   :  { %v2203_v21 = vadd.f32 %v2202_v17, %v2201_v54 }
 0x2b2   :  { %1475 = vst.msk [vmem:[#allocation8] sm:$0xff] %vm920_vm1, %v2203_v21  ;;  %v2204_v50 = vpop.f32.mrb[28].mxu0  ;;  %v1387_v51 = vsel %vm920_vm1, %v2203_v21, -inf }
 0x2b3   :  { %v2205_v7 = vpop.f32.mrb[29].mxu0  ;;  %1388 = vmax.xlane.f32.xlu0 %v1387_v51 }
 0x2b4   :  { %v2206_v22 = vadd.f32 %v2205_v7, %v2204_v50 }
 0x2b6   :  { %1476 = vst.msk [vmem:[#allocation8 + $0x8] sm:$0xff] %vm920_vm1, %v2206_v22  ;;  %v2207_v42 = vpop.f32.mrb[30].mxu0  ;;  %v1390_v32 = vsel %vm920_vm1, %v2206_v22, -inf }
 0x2b7   :  { %v2208_v43 = vpop.f32.mrb[31].mxu0  ;;  %1391 = vmax.xlane.f32.xlu0 %v1390_v32 }
 0x2b8   :  { %v2209_v41 = vadd.f32 %v2208_v43, %v2207_v42 }
 0x2ba   :  { %1477 = vst.msk [vmem:[#allocation8 + $0x10] sm:$0xff] %vm920_vm1, %v2209_v41  ;;  %v2210_v44 = vpop.f32.mrb[32].mxu0  ;;  %v1393_v26 = vsel %vm920_vm1, %v2209_v41, -inf }
 0x2bb   :  { %v2211_v34 = vpop.f32.mrb[33].mxu0  ;;  %1394 = vmax.xlane.f32.xlu1 %v1393_v26 }
 0x2bc   :  { %v2212_v35 = vadd.f32 %v2211_v34, %v2210_v44 }
 0x2be   :  { %1478 = vst.msk [vmem:[#allocation8 + $0x18] sm:$0xff] %vm920_vm1, %v2212_v35  ;;  %v2213_v47 = vpop.f32.mrb[34].mxu0  ;;  %v1396_v49 = vsel %vm920_vm1, %v2212_v35, -inf }
 0x2bf   :  { %v2214_v52 = vpop.f32.mrb[35].mxu0  ;;  %1397 = vmax.xlane.f32.xlu1 %v1396_v49  ;;  %v61_v49 = vld [vmem:[%s3453_s1 + $0x10] sm:$0xff] }
 0x2c0   :  { %v2215_v53 = vadd.f32 %v2214_v52, %v2213_v47  ;;  %v62_v52 = vld [vmem:[%s3453_s1 + $0x18] sm:$0xff] }
 0x2c2   :  { %1479 = vst.msk [vmem:[#allocation8 + $0x20] sm:$0xff] %vm920_vm1, %v2215_v53  ;;  %v2216_v55 = vpop.f32.mrb[36].mxu0  ;;  %v1399_v4 = vsel %vm920_vm1, %v2215_v53, -inf }
 0x2c3   :  { %v2217_v56 = vpop.f32.mrb[37].mxu0  ;;  %1400 = vmax.xlane.f32.xlu0 %v1399_v4 }
 0x2c4   :  { %v2218_v57 = vadd.f32 %v2217_v56, %v2216_v55  ;;  %v2629_v55 = vpack.c.bf16 %v62_v52, %v61_v49 }
 0x2c6   :  { %1480 = vst.msk [vmem:[#allocation8 + $0x28] sm:$0xff] %vm920_vm1, %v2218_v57  ;;  %v2219_v58 = vpop.f32.mrb[38].mxu0  ;;  %v1402_v60 = vsel %vm920_vm1, %v2218_v57, -inf }
 0x2c7   :  { %v2220_v46 = vpop.f32.mrb[39].mxu0  ;;  %1403 = vmax.xlane.f32.xlu1 %v1402_v60 }
 0x2c8   :  { %v2221_v48 = vadd.f32 %v2220_v46, %v2219_v58  ;;  %v64_v58 = vld [vmem:[%s3453_s1 + $0x28] sm:$0xff] }
 0x2ca   :  { %1481 = vst.msk [vmem:[#allocation8 + $0x30] sm:$0xff] %vm920_vm1, %v2221_v48  ;;  %v2222_v13 = vpop.f32.mrb[40].mxu0  ;;  %v1405_v61 = vsel %vm920_vm1, %v2221_v48, -inf }
 0x2cb   :  { %1406 = vmax.xlane.f32.xlu0 %v1405_v61  ;;  %v2223_v62 = vpop.f32.mrb[41].mxu0  ;;  %v65_v61 = vld [vmem:[%s3453_s1 + $0x30] sm:$0xff] }
 0x2cc   :  { %v2224_v63 = vadd.f32 %v2223_v62, %v2222_v13  ;;  %v66_v62 = vld [vmem:[%s3453_s1 + $0x38] sm:$0xff] }
 0x2ce   :  { %1482 = vst.msk [vmem:[#allocation8 + $0x38] sm:$0xff] %vm920_vm1, %v2224_v63  ;;  %v1408_v0 = vsel %vm920_vm1, %v2224_v63, -inf }
 0x2cf   :  { %1409 = vmax.xlane.f32.xlu1 %v1408_v0  ;;  %v2635_v0 = vpack.c.bf16 %v66_v62, %v65_v61 }
 0x340   :  { %v1389_v8 = vpop.xlane.xlu0 %1388 }
 0x341   :  { %v1411_v9 = vsub.f32 %v2203_v21, %v1389_v8  ;;  %v68_v8 = vld [vmem:[%s3453_s1 + $0x48] sm:$0xff] }
 0x343   :  { %v1419_v10 = vmul.f32 1.442695, %v1411_v9 }
 0x344   :  { %v1392_v11 = vpop.xlane.xlu0 %1391 }
 0x345   :  { %2711 = vpow2.f32 %v1419_v10  ;;  %v1412_v12 = vsub.f32 %v2206_v22, %v1392_v11  ;;  %v2638_v10 = vpack.c.bf16 %v68_v8, %v67_v6 }
 0x347   :  { %v1421_v14 = vmul.f32 1.442695, %v1412_v12 }
 0x348   :  { %v1395_v15 = vpop.xlane.xlu1 %1394 }
 0x349   :  { %2713 = vpow2.f32 %v1421_v14  ;;  %v1413_v59 = vsub.f32 %v2209_v41, %v1395_v15  ;;  %v69_v14 = vld [vmem:[%s3453_s1 + $0x50] sm:$0xff]  ;;  %v70_v15 = vld [vmem:[%s3453_s1 + $0x58] sm:$0xff] }
 0x34b   :  { %v1423_v18 = vmul.f32 1.442695, %v1413_v59 }
 0x34c   :  { %v1398_v31 = vpop.xlane.xlu1 %1397 }
 0x34d   :  { %2715 = vpow2.f32 %v1423_v18  ;;  %v1414_v36 = vsub.f32 %v2212_v35, %v1398_v31  ;;  %v2641_v18 = vpack.c.bf16 %v70_v15, %v69_v14 }
 0x34f   :  { %v2712_v19 = vpop.eup %2711  ;;  %v1425_v20 = vmul.f32 1.442695, %v1414_v36 }
 0x350   :  { %v1401_v23 = vpop.xlane.xlu0 %1400  ;;  %v1435_v1 = vsel %vm920_vm1, %v2712_v19, 0.0 }
 0x351   :  { %2717 = vpow2.f32 %v1425_v20  ;;  %v1415_v24 = vsub.f32 %v2215_v53, %v1401_v23  ;;  %1436 = vadd.xlane.f32.xlu0 %v1435_v1  ;;  %v72_v20 = vld [vmem:[%s3453_s1 + $0x68] sm:$0xff] }
 0x353   :  { %v2714_v27 = vpop.eup %2713  ;;  %v1427_v2 = vmul.f32 1.442695, %v1415_v24 }
 0x354   :  { %v1404_v28 = vpop.xlane.xlu1 %1403  ;;  %v1438_v29 = vsel %vm920_vm1, %v2714_v27, 0.0 }
 0x355   :  { %2719 = vpow2.f32 %v1427_v2  ;;  %v1416_v30 = vsub.f32 %v2218_v57, %v1404_v28  ;;  %1439 = vadd.xlane.f32.xlu1 %v1438_v29  ;;  %v63_v57 = vld [vmem:[%s3453_s1 + $0x20] sm:$0xff]  ;;  %v74_v2 = vld [vmem:[%s3453_s1 + $0x78] sm:$0xff] }
 0x356   :  { %v2632_v46 = vpack.c.bf16 %v64_v58, %v63_v57 }
 0x357   :  { %v3289_v33 = vpop.eup %2715  ;;  %v1429_v37 = vmul.f32 1.442695, %v1416_v30 }
 0x358   :  { %v1407_v38 = vpop.xlane.xlu0 %1406  ;;  %v1441_v39 = vsel %vm920_vm1, %v3289_v33, 0.0 }
 0x359   :  { %2721 = vpow2.f32 %v1429_v37  ;;  %v1417_v40 = vsub.f32 %v2221_v48, %v1407_v38  ;;  %1442 = vadd.xlane.f32.xlu0 %v1441_v39 }
 0x35b   :  { %v3293_v16 = vpop.eup %2717  ;;  %v1431_v54 = vmul.f32 1.442695, %v1417_v40 }
 0x35c   :  { %v1410_v17 = vpop.xlane.xlu1 %1409  ;;  %v1444_v21 = vsel %vm920_vm1, %v3293_v16, 0.0 }
 0x35d   :  { %2723 = vpow2.f32 %v1431_v54  ;;  %v1418_v50 = vsub.f32 %v2224_v63, %v1410_v17  ;;  %1445 = vadd.xlane.f32.xlu1 %v1444_v21 }
 0x35f   :  { %v3297_v51 = vpop.eup %2719  ;;  %v1433_v7 = vmul.f32 1.442695, %v1418_v50 }
 0x360   :  { %v1447_v22 = vsel %vm920_vm1, %v3297_v51, 0.0 }
 0x361   :  { %2725 = vpow2.f32 %v1433_v7  ;;  %1448 = vadd.xlane.f32.xlu0 %v1447_v22 }
 0x363   :  { %v3301_v42 = vpop.eup %2721 }
 0x364   :  { %v1450_v32 = vsel %vm920_vm1, %v3301_v42, 0.0 }
 0x365   :  { %1451 = vadd.xlane.f32.xlu1 %v1450_v32 }
 0x367   :  { %v3305_v43 = vpop.eup %2723 }
 0x368   :  { %v1453_v41 = vsel %vm920_vm1, %v3305_v43, 0.0 }
 0x369   :  { %1454 = vadd.xlane.f32.xlu0 %v1453_v41 }
 0x36b   :  { %v3309_v44 = vpop.eup %2725 }
 0x36c   :  { %v1456_v26 = vsel %vm920_vm1, %v3309_v44, 0.0 }
 0x36d   :  { %1457 = vadd.xlane.f32.xlu1 %v1456_v26 }
 0x3de   :  { %v1437_v34 = vpop.xlane.xlu0 %1436 }
 0x3df   :  { %2727 = vrcp.f32 %v1437_v34 }
 0x3e2   :  { %v1440_v35 = vpop.xlane.xlu1 %1439 }
 0x3e3   :  { %2729 = vrcp.f32 %v1440_v35 }
 0x3e6   :  { %v1443_v47 = vpop.xlane.xlu0 %1442 }
 0x3e7   :  { %2731 = vrcp.f32 %v1443_v47 }
 0x3e9   :  { %v2728_v53 = vpop.eup %2727 }
 0x3ea   :  { %v1460_v4 = vmul.f32 %v2728_v53, %v2712_v19  ;;  %v1446_v56 = vpop.xlane.xlu1 %1445  ;;  %v71_v19 = vld [vmem:[%s3453_s1 + $0x60] sm:$0xff] }
 0x3eb   :  { %2733 = vrcp.f32 %v1446_v56  ;;  %v2644_v1 = vpack.c.bf16 %v72_v20, %v71_v19 }
 0x3ec   :  { %1483 = vst.msk [vmem:[#allocation6] sm:$0xff] %vm920_vm1, %v1460_v4  ;;  %2274 = vmatmul.mubr.msk.f32.vlgmr.msra.gmra.mrb[42].mxu0 %vm920_vm1, %v1460_v4 }
 0x3ed   :  { %v2730_v60 = vpop.eup %2729  ;;  %2630 = vmatpush3.bf16.msra.mxu0 %v2629_v55  ;;  %2280 = vmatprep.mubr.msk.f32.mxu0 %vm2843_vm2, %v2841_v5 }
 0x3ee   :  { %v1462_v48 = vmul.f32 %v2730_v60, %v2714_v27  ;;  %v1449_v13 = vpop.xlane.xlu0 %1448  ;;  %2631 = vmatprep.subr.bf16.mxu0 %v2842_v25  ;;  %v73_v27 = vld [vmem:[%s3453_s1 + $0x70] sm:$0xff]  ;;  %s2844_s1 = smov [#allocation6]  }
 0x3ef   :  { %2735 = vrcp.f32 %v1449_v13  ;;  %v2647_v29 = vpack.c.bf16 %v74_v2, %v73_v27  ;;  %s2101_s12 = sshll.u32 %s2844_s1, 4  ;;  %s2102_s12 = int_to_ptr.vmem [resolvable:$true] %s2101_s12 }
 0x3f0   :  { %1484 = vst.msk [vmem:[#allocation6 + $0x8] sm:$0xff] %vm920_vm1, %v1462_v48  ;;  %2281 = vmatmul.mubr.msk.f32.vlgmr.msra.gmra.mrb[44].mxu0 %vm920_vm1, %v1462_v48  ;;  %s2765_s13 = scalar_lea.vmem %s2102_s12, 1024  ;;  %p2770_p9 = scmp.lt.s32.totalorder %s2102_s12, %s2102_s12 }
 0x3f1   :  { %v2732_v63 = vpop.eup %2731  ;;  %2633 = vmatpush3.bf16.msra.mxu0 %v2632_v46  ;;  %2287 = vmatprep.mubr.msk.f32.mxu0 %vm2843_vm2, %v2841_v5  ;;  %p2766_p8 = scmp.ne.s32.totalorder %s2102_s12, %s2765_s13  ;;  %p2771_p10 = scmp.lt.s32.totalorder %s2765_s13, %s2765_s13 }
 0x3f2   :  { %v1464_v3 = vmul.f32 %v2732_v63, %v3289_v33  ;;  %v1452_v45 = vpop.xlane.xlu1 %1451  ;;  %2634 = vmatprep.subr.bf16.mxu0 %v2842_v25 }
 0x3f3   :  { %2737 = vrcp.f32 %v1452_v45  ;;  %p2772_p11 = por %p2771_p10, %p2770_p9 }
 0x3f4   :  { %1485 = vst.msk [vmem:[#allocation6 + $0x10] sm:$0xff] %vm920_vm1, %v1464_v3  ;;  %2288 = vmatmul.mubr.msk.f32.vlgmr.msra.gmra.mrb[46].mxu0 %vm920_vm1, %v1464_v3 }
 0x3f5   :  { %v2734_v9 = vpop.eup %2733  ;;  %2636 = vmatpush3.bf16.msra.mxu0 %v2635_v0  ;;  %2294 = vmatprep.mubr.msk.f32.mxu0 %vm2843_vm2, %v2841_v5  ;;  %p2773_p12 = pnand %p2772_p11, %p2766_p8 }
 0x3f6   :  { %v1466_v11 = vmul.f32 %v2734_v9, %v3293_v16  ;;  %v1455_v12 = vpop.xlane.xlu0 %1454  ;;  %2637 = vmatprep.subr.bf16.mxu0 %v2842_v25 }
 0x3f7   :  { %2739 = vrcp.f32 %v1455_v12 }
 0x3f8   :  { %1486 = vst.msk [vmem:[#allocation6 + $0x18] sm:$0xff] %vm920_vm1, %v1466_v11  ;;  %2295 = vmatmul.mubr.msk.f32.vlgmr.msra.gmra.mrb[48].mxu0 %vm920_vm1, %v1466_v11 }
 0x3f9   :  { %v2736_v59 = vpop.eup %2735  ;;  %2639 = vmatpush3.bf16.msra.mxu0 %v2638_v10  ;;  %2301 = vmatprep.mubr.msk.f32.mxu0 %vm2843_vm2, %v2841_v5 }
 0x3fa   :  { %v1468_v31 = vmul.f32 %v2736_v59, %v3297_v51  ;;  %v1458_v36 = vpop.xlane.xlu1 %1457  ;;  %2640 = vmatprep.subr.bf16.mxu0 %v2842_v25 }
 0x3fb   :  { %2741 = vrcp.f32 %v1458_v36 }
 0x3fc   :  { %1487 = vst.msk [vmem:[#allocation6 + $0x20] sm:$0xff] %vm920_vm1, %v1468_v31  ;;  %2302 = vmatmul.mubr.msk.f32.vlgmr.msra.gmra.mrb[50].mxu0 %vm920_vm1, %v1468_v31 }
 0x3fd   :  { %v2738_v23 = vpop.eup %2737  ;;  %2642 = vmatpush3.bf16.msra.mxu0 %v2641_v18  ;;  %2308 = vmatprep.mubr.msk.f32.mxu0 %vm2843_vm2, %v2841_v5 }
 0x3fe   :  { %v1470_v24 = vmul.f32 %v2738_v23, %v3301_v42  ;;  %2643 = vmatprep.subr.bf16.mxu0 %v2842_v25 }
 0x400   :  { %1488 = vst.msk [vmem:[#allocation6 + $0x28] sm:$0xff] %vm920_vm1, %v1470_v24  ;;  %2309 = vmatmul.mubr.msk.f32.vlgmr.msra.gmra.mrb[52].mxu0 %vm920_vm1, %v1470_v24 }
 0x401   :  { %v2740_v28 = vpop.eup %2739  ;;  %2645 = vmatpush3.bf16.msra.mxu0 %v2644_v1  ;;  %2315 = vmatprep.mubr.msk.f32.mxu0 %vm2843_vm2, %v2841_v5 }
 0x402   :  { %v1472_v30 = vmul.f32 %v2740_v28, %v3305_v43  ;;  %2646 = vmatprep.subr.bf16.mxu0 %v2842_v25 }
 0x404   :  { %1489 = vst.msk [vmem:[#allocation6 + $0x30] sm:$0xff] %vm920_vm1, %v1472_v30  ;;  %2316 = vmatmul.mubr.msk.f32.vlgmr.msra.gmra.mrb[54].mxu0 %vm920_vm1, %v1472_v30 }
 0x405   :  { %v2742_v33 = vpop.eup %2741  ;;  %2648 = vmatpush3.bf16.msra.mxu0 %v2647_v29  ;;  %2322 = vmatprep.mubr.msk.f32.mxu0 %vm2843_vm2, %v2841_v5 }
 0x406   :  { %v1474_v37 = vmul.f32 %v2742_v33, %v3309_v44 }
 0x408   :  { %1490 = vst.msk [vmem:[#allocation6 + $0x38] sm:$0xff] %vm920_vm1, %v1474_v37  ;;  %2323 = vmatmul.mubr.msk.f32.vlgmr.msra.gmra.mrb[56].mxu0 %vm920_vm1, %v1474_v37 }
 0x409   :  { %2776 = shalt.err (!%p2773_p12)
}
 0x40a   :  { %s2777_s7 = scalar_lea.hbm %s3462_s10, 1024 }
 0x40b   :  { %p2778_p13 = scmp.ne.s32.totalorder %s3462_s10, %s2777_s7  ;;  %p2781_p0 = scmp.lt.u32.totalorder %s2777_s7, %s3462_s10 }
 0x40d   :  { %p2783_p1 = pnand %p2781_p0, %p2778_p13 }
 0x40f   :  { %2786 = shalt.err (!%p2783_p1)
}
 0x410   :  { %s2845_s4 = smov 128   ;;  %s2846_s18 = smov 8  }
 0x411   :  { %2107 = dma.vmem_to_hbm [thread:$0]  %s2102_s12, 1024, %s3462_s10, [#allocation7], %s2845_s4, %s2845_s4, %s2846_s18  }
 0x412   :  { %s2847_s3 = smov [#allocation8]  }
 0x413   :  { %s2113_s21 = sshll.u32 %s2847_s3, 4  ;;  %s2114_s21 = int_to_ptr.vmem [resolvable:$true] %s2113_s21 }
 0x414   :  { %s2787_s22 = scalar_lea.vmem %s2114_s21, 1024  ;;  %p2792_p3 = scmp.lt.s32.totalorder %s2114_s21, %s2114_s21 }
 0x415   :  { %p2788_p2 = scmp.ne.s32.totalorder %s2114_s21, %s2787_s22  ;;  %p2793_p4 = scmp.lt.s32.totalorder %s2787_s22, %s2787_s22 }
 0x417   :  { %p2794_p5 = por %p2793_p4, %p2792_p3 }
 0x419   :  { %p2795_p6 = pnand %p2794_p5, %p2788_p2 }
 0x41b   :  { %2798 = shalt.err (!%p2795_p6)
}
 0x41c   :  { %s2799_s25 = scalar_lea.hbm %s3463_s11, 1024 }
 0x41d   :  { %p2800_p7 = scmp.ne.s32.totalorder %s3463_s11, %s2799_s25  ;;  %p2803_p8 = scmp.lt.u32.totalorder %s2799_s25, %s3463_s11 }
 0x41f   :  { %p2805_p9 = pnand %p2803_p8, %p2800_p7 }
 0x421   :  { %2808 = shalt.err (!%p2805_p9)
}
 0x422   :  { %2119 = dma.vmem_to_hbm [thread:$0]  %s2114_s21, 1024, %s3463_s11, [#allocation7], %s2845_s4, %s2845_s4, %s2846_s18   ;;  %vm2075_vm3 = vcmask 523264  }
 0x423   :  { %s2848_s11 = smov [#allocation5]  }
 0x424   :  { %s2089_s28 = sshll.u32 %s2848_s11, 4  ;;  %s2090_s28 = int_to_ptr.vmem [resolvable:$true] %s2089_s28 }
 0x425   :  { %s2809_s29 = scalar_lea.vmem %s2090_s28, 1024  ;;  %p2814_p11 = scmp.lt.s32.totalorder %s2090_s28, %s2090_s28 }
 0x426   :  { %p2810_p10 = scmp.ne.s32.totalorder %s2090_s28, %s2809_s29  ;;  %p2815_p12 = scmp.lt.s32.totalorder %s2809_s29, %s2809_s29 }
 0x428   :  { %p2816_p13 = por %p2815_p12, %p2814_p11 }
 0x42a   :  { %p2817_p0 = pnand %p2816_p13, %p2810_p10 }
 0x4bf   :  { %v1560_v5 = vpop.f32.mrb[42].mxu0 }
 0x4c0   :  { %2076 = vst.msk [vmem:[#allocation5] sm:$0xff] %vm2075_vm3, %v1560_v5  ;;  %v2275_v25 = vpop.f32.mrb[43].mxu0 }
 0x4c3   :  { %v1633_v38 = vpop.f32.mrb[44].mxu0 }
 0x4c4   :  { %2077 = vst.msk [vmem:[#allocation5 + $0x8] sm:$0xff] %vm2075_vm3, %v1633_v38  ;;  %v2282_v39 = vpop.f32.mrb[45].mxu0 }
 0x4c7   :  { %v1706_v40 = vpop.f32.mrb[46].mxu0 }
 0x4c8   :  { %2078 = vst.msk [vmem:[#allocation5 + $0x10] sm:$0xff] %vm2075_vm3, %v1706_v40  ;;  %v2289_v16 = vpop.f32.mrb[47].mxu0 }
 0x4cb   :  { %v1779_v54 = vpop.f32.mrb[48].mxu0 }
 0x4cc   :  { %2079 = vst.msk [vmem:[#allocation5 + $0x18] sm:$0xff] %vm2075_vm3, %v1779_v54  ;;  %v2296_v17 = vpop.f32.mrb[49].mxu0 }
 0x4cf   :  { %v1852_v21 = vpop.f32.mrb[50].mxu0 }
 0x4d0   :  { %2080 = vst.msk [vmem:[#allocation5 + $0x20] sm:$0xff] %vm2075_vm3, %v1852_v21  ;;  %v2303_v50 = vpop.f32.mrb[51].mxu0 }
 0x4d3   :  { %v1925_v51 = vpop.f32.mrb[52].mxu0 }
 0x4d4   :  { %2081 = vst.msk [vmem:[#allocation5 + $0x28] sm:$0xff] %vm2075_vm3, %v1925_v51  ;;  %v2310_v7 = vpop.f32.mrb[53].mxu0 }
 0x4d7   :  { %v1998_v22 = vpop.f32.mrb[54].mxu0 }
 0x4d8   :  { %2082 = vst.msk [vmem:[#allocation5 + $0x30] sm:$0xff] %vm2075_vm3, %v1998_v22  ;;  %v2317_v42 = vpop.f32.mrb[55].mxu0 }
 0x4db   :  { %v2071_v32 = vpop.f32.mrb[56].mxu0 }
 0x4dc   :  { %2083 = vst.msk [vmem:[#allocation5 + $0x38] sm:$0xff] %vm2075_vm3, %v2071_v32  ;;  %v2324_v43 = vpop.f32.mrb[57].mxu0 }
 0x4dd   :  { %2820 = shalt.err (!%p2817_p0)
}
 0x4de   :  { %s2821_s12 = scalar_lea.hbm %s3461_s9, 1024 }
 0x4df   :  { %p2822_p1 = scmp.ne.s32.totalorder %s3461_s9, %s2821_s12  ;;  %p2825_p2 = scmp.lt.u32.totalorder %s2821_s12, %s3461_s9 }
 0x4e1   :  { %p2827_p3 = pnand %p2825_p2, %p2822_p1 }
 0x4e3   :  { %2830 = shalt.err (!%p2827_p3)
}
 0x4e4   :  { %2095 = dma.vmem_to_hbm [thread:$0]  %s2090_s28, 1024, %s3461_s9, [#allocation4], %s2845_s4, %s2845_s4, %s2846_s18  }
 0x4e5   :  { %2833 = dma.done.wait [#allocation4], 1024  }
 0x4e6   :  { %2834 = vsyncadd [#allocation4], 4294966272 }
 0x4e7   :  { %2835 = dma.done.wait [#allocation7], 2048  }
 0x4e8   :  { %2836 = vsyncadd [#allocation7], 4294965248 }
 0x4e9   :  { %2129 = vsyncpa [#allocation3], 1 }
 0x4ea   :  { %2130 = vsyncpa [#allocation4], 1 }
 0x4eb   :  { %2131 = vsyncpa [#allocation7], 1 }

</bundles_post_ra>
